<compile_context>
chip_gen: v5e
topology: v5e:2x2
jax: 0.10.0
libtpu: 0.0.40
codegen_flags: <defaults>
</compile_context>

<pallas_src>
import math

import jax
import jax.numpy as jnp
from jax import lax
from jax.experimental import pallas as pl
from jax.experimental.pallas import tpu as pltpu  # noqa: F401 (TPU backend)

# ---- small, module-consistent hyper-parameters -----------------------------
FEATURE_SIZE = 128      # d_model (module default 250; small, lane friendly)
NHEAD = 2
HEAD_DIM = FEATURE_SIZE // NHEAD
DIM_FF = 256            # dim_feedforward (module default 2048; small)
LSTM_HIDDEN = 32
HEAD_HID = 256
LN_EPS = 1e-5
NEG_INF = -1e30

SEQ = 8                 # S (sequence length)
BATCH = 4               # B (batch size)
ROWS = BATCH * SEQ      # 32 flattened (b, s) rows

SLAB_W = 3 * FEATURE_SIZE   # 384 lanes = widest packed tensor (w_in / b_in)

_E, _F, _H, _HH = FEATURE_SIZE, DIM_FF, LSTM_HIDDEN, HEAD_HID


def _build_layout(entries):
    lay, off = {}, 0
    for name, (r, c) in entries:
        assert c <= SLAB_W
        lay[name] = (off, r, c)
        off += r
    return lay, ((off + 7) // 8) * 8


# weight slab (bf16): every matmul operand; row offsets are 8-aligned and
# every column group starts at lane 0 -> each slice is a tile-aligned view.
W_LAYOUT, W_ROWS = _build_layout([
    ("w_in",   (_E, 3 * _E)),        # QKV in-projection
    ("w_out",  (_E, _E)),            # attention out-projection
    ("w_ff1",  (_E, _F)),
    ("w_ff2",  (_F, _E)),
    ("wih0",   (_E, 4 * _H)),        # LSTM layer-0 input proj (hoisted)
    ("whh_bd", (2 * _H, 8 * _H)),    # block-diag [whh0 (+) whh1]
    ("wih1",   (_H, 4 * _H)),
    ("w_h1",   (_H, _HH)),
    ("w_h2p",  (_HH, 128)),          # final (256,1) zero-padded to 128 lanes
])

# const slab (f32): pre-tiled pe, block-diag causal mask, per-head lane masks,
# and every bias / LayerNorm parameter -> ONE DMA instead of ~20 tiny ones.
C_LAYOUT, C_ROWS = _build_layout([
    ("pe_rep",    (ROWS, _E)),
    ("attn_mask", (ROWS, ROWS)),
    ("hmask",     (NHEAD, _E)),
    ("b_in",      (1, 3 * _E)),
    ("b_out",     (1, _E)),
    ("ln1_g",     (1, _E)),
    ("ln1_b",     (1, _E)),
    ("b_ff1",     (1, _F)),
    ("b_ff2",     (1, _E)),
    ("ln2_g",     (1, _E)),
    ("ln2_b",     (1, _E)),
    ("b0",        (1, 4 * _H)),
    ("b1",        (1, 4 * _H)),
    ("b_h1",      (1, _HH)),
    ("b_h2p",     (1, 128)),
])


# ============================ fused Pallas kernel ===========================

def _layernorm(x, g, b):
    mu = jnp.mean(x, axis=-1, keepdims=True)
    xc = x - mu
    var = jnp.mean(xc * xc, axis=-1, keepdims=True)
    return xc * lax.rsqrt(var + LN_EPS) * g + b


def fused_forward_kernel(src_ref, w_ref, c_ref, o_ref):
    B, S, E = src_ref.shape
    R = B * S
    H = LSTM_HIDDEN
    f32, bf16 = jnp.float32, jnp.bfloat16

    def w_(name):                               # bf16 weight, tile-aligned view
        r0, nr, nc = W_LAYOUT[name]
        return w_ref[r0:r0 + nr, 0:nc]

    def c_(name):                               # f32 constant / bias row(s)
        r0, nr, nc = C_LAYOUT[name]
        return c_ref[r0:r0 + nr, 0:nc]

    def mm(a, name):                            # bf16 MXU matmul, f32 accumulate
        return jnp.dot(a.astype(bf16), w_(name), preferred_element_type=f32)

    # ---- PositionalEncoding: x + pe (pe pre-tiled over batch; free reshape) --
    x = src_ref[...].reshape(R, E) + c_("pe_rep")            # (32, 128) f32

    # ---- multi-head self-attention: all batches in one block-diag matmul -----
    qkv = mm(x, "w_in") + c_("b_in")                          # (32, 384)
    q = qkv[:, 0:E] * (1.0 / math.sqrt(HEAD_DIM))             # 128-aligned views
    k = qkv[:, E:2 * E]
    v = qkv[:, 2 * E:3 * E]
    q_bf = q.astype(bf16)

    addmask = c_("attn_mask")                                 # (32, 32) additive
    hm_off = C_LAYOUT["hmask"][0]
    attn = jnp.zeros((R, E), f32)
    for h in range(NHEAD):                                    # static, 2 heads
        hm = c_ref[hm_off + h:hm_off + h + 1, 0:E]            # (1,128) 0/1 lane mask
        kh = (k * hm).astype(bf16)                            # other head lanes -> 0
        vh = (v * hm).astype(bf16)
        s = lax.dot_general(q_bf, kh, (((1,), (1,)), ((), ())),
                            preferred_element_type=f32) + addmask
        m = jnp.max(s, axis=-1, keepdims=True)
        p = jnp.exp(s - m)
        p = p * pl.reciprocal(jnp.sum(p, axis=-1, keepdims=True), approx=True)
        # PV lands head h's output in its own lane group -> merge by plain add.
        attn = attn + jnp.dot(p.astype(bf16), vh, preferred_element_type=f32)

    attn_out = mm(attn, "w_out") + c_("b_out")

    # ---- residual + LN1, feed-forward (relu), residual + LN2 -----------------
    x1 = _layernorm(x + attn_out, c_("ln1_g"), c_("ln1_b"))
    hff = jnp.maximum(mm(x1, "w_ff1") + c_("b_ff1"), 0.0)
    enc = _layernorm(x1 + mm(hff, "w_ff2") + c_("b_ff2"),
                     c_("ln2_g"), c_("ln2_b"))                # (32, 128)

    # ---- 2-layer LSTM (batch_first=True on (S,B,E): batch = S, time = B) ------
    gates_x0 = mm(enc, "wih0") + c_("b0")                     # hoisted input proj
    b1 = c_("b1")

    def cell(g_all, c_prev):
        sig = jax.nn.sigmoid(g_all)                           # full-vreg EUP pass
        i_g, f_g, o_g = sig[:, 0:H], sig[:, H:2 * H], sig[:, 3 * H:4 * H]
        g_g = jnp.tanh(g_all[:, 2 * H:3 * H])
        c_new = f_g * c_prev + i_g * g_g
        return o_g * jnp.tanh(c_new), c_new

    zeros = jnp.zeros((S, H), f32)
    h0, c0, h1, c1 = zeros, zeros, zeros, zeros
    for t in range(B):                                        # fully unrolled, B=4
        # ONE fused recurrent matmul for both layers (block-diagonal whh).
        rec = mm(jnp.concatenate([h0, h1], axis=1), "whh_bd")   # (8, 256)
        h0, c0 = cell(gates_x0[t * S:(t + 1) * S, :] + rec[:, 0:4 * H], c0)
        h1, c1 = cell(mm(h0, "wih1") + b1 + rec[:, 4 * H:8 * H], c1)
    # h1 after the last timestep == lstm_out[:, -1, :]  -> (S, H)

    # ---- head MLP: LeakyReLU(True) == identity, Dropout == identity ----------
    hmid = mm(h1, "w_h1") + c_("b_h1")
    o_ref[...] = mm(hmid, "w_h2p") + c_("b_h2p")   # (S,128) lane-dense; col 0 = result


# ============================= JAX glue =====================================

def make_positional_encoding(seq_len, d_model):
    position = jnp.arange(seq_len, dtype=jnp.float32)[:, None]
    div_term = jnp.exp(jnp.arange(0, d_model, 2, dtype=jnp.float32)
                       * (-math.log(10000.0) / d_model))
    pe = jnp.zeros((seq_len, d_model), jnp.float32)
    pe = pe.at[:, 0::2].set(jnp.sin(position * div_term))
    pe = pe.at[:, 1::2].set(jnp.cos(position * div_term))
    return pe                                   # (S, E)


def init_params(key):
    E, FF, H = FEATURE_SIZE, DIM_FF, LSTM_HIDDEN
    ks = jax.random.split(key, 16)

    def w(k, shape, scale=0.05):
        return scale * jax.random.normal(k, shape, jnp.float32)

    p = {}
    # Transformer encoder layer (weights stored as (in_features, out_features))
    p["w_in"] = w(ks[0], (E, 3 * E));  p["b_in"] = w(ks[1], (1, 3 * E))
    p["w_out"] = w(ks[2], (E, E));     p["b_out"] = w(ks[3], (1, E))
    p["ln1_g"] = jnp.ones((1, E), jnp.float32)
    p["ln1_b"] = jnp.zeros((1, E), jnp.float32)
    p["w_ff1"] = w(ks[4], (E, FF));    p["b_ff1"] = w(ks[5], (1, FF))
    p["w_ff2"] = w(ks[6], (FF, E));    p["b_ff2"] = w(ks[7], (1, E))
    p["ln2_g"] = jnp.ones((1, E), jnp.float32)
    p["ln2_b"] = jnp.zeros((1, E), jnp.float32)
    # LSTM (layer 0: E->H, layer 1: H->H); b = b_ih + b_hh folded, gate order [i,f,g,o]
    p["wih0"] = w(ks[8], (E, 4 * H));  p["whh0"] = w(ks[9], (H, 4 * H))
    p["b0"] = w(ks[10], (1, 4 * H))
    p["wih1"] = w(ks[11], (H, 4 * H)); p["whh1"] = w(ks[12], (H, 4 * H))
    p["b1"] = w(ks[13], (1, 4 * H))
    # Head MLP H -> 256 -> 1
    p["w_h1"] = w(ks[14], (H, HEAD_HID)); p["b_h1"] = jnp.zeros((1, HEAD_HID), jnp.float32)
    p["w_h2"] = w(ks[15], (HEAD_HID, 1)); p["b_h2"] = jnp.zeros((1, 1), jnp.float32)
    return p


def pack_params(params):
    """Runs ONCE outside the jitted forward: pack every weight / bias / constant
    into one bf16 weight slab + one f32 constant slab (2 input DMAs total)."""
    E, H, HH = FEATURE_SIZE, LSTM_HIDDEN, HEAD_HID
    S, B, R = SEQ, BATCH, ROWS

    # block-diagonal recurrent weight [whh0 (+) whh1]
    whh_bd = jnp.zeros((2 * H, 8 * H), jnp.float32)
    whh_bd = whh_bd.at[0:H, 0:4 * H].set(params["whh0"])
    whh_bd = whh_bd.at[H:2 * H, 4 * H:8 * H].set(params["whh1"])
    # 1-wide head weight/bias zero-padded to 128 lanes (unmasked output store)
    w_h2p = jnp.zeros((HH, 128), jnp.float32).at[:, 0:1].set(params["w_h2"])
    b_h2p = jnp.zeros((1, 128), jnp.float32).at[:, 0:1].set(params["b_h2"])

    w_vals = dict(params, whh_bd=whh_bd, w_h2p=w_h2p)
    wslab = jnp.zeros((W_ROWS, SLAB_W), jnp.float32)
    for name, (r0, nr, nc) in W_LAYOUT.items():
        wslab = wslab.at[r0:r0 + nr, 0:nc].set(w_vals[name])
    wslab = wslab.astype(jnp.bfloat16)

    # constants: batch-tiled positional encoding, block-diagonal causal mask,
    # per-head lane masks, and every bias / LayerNorm parameter.
    pe_rep = jnp.tile(make_positional_encoding(S, E), (B, 1))          # (32,128)
    r = jnp.arange(R)
    same_b = (r[:, None] // S) == (r[None, :] // S)
    causal = r[None, :] <= r[:, None]
    attn_mask = jnp.where(same_b & causal, 0.0, NEG_INF).astype(jnp.float32)
    lane = jnp.arange(E)
    hmask = jnp.stack(
        [((lane >= h * HEAD_DIM) & (lane < (h + 1) * HEAD_DIM)).astype(jnp.float32)
         for h in range(NHEAD)])                                       # (2,128)

    c_vals = dict(params, pe_rep=pe_rep, attn_mask=attn_mask, hmask=hmask,
                  b_h2p=b_h2p)
    cslab = jnp.zeros((C_ROWS, SLAB_W), jnp.float32)
    for name, (r0, nr, nc) in C_LAYOUT.items():
        cslab = cslab.at[r0:r0 + nr, 0:nc].set(c_vals[name])
    return wslab, cslab


@jax.jit
def transam_lstm_forward(wslab, cslab, src):
    """src: (S, B, E) float32, as in the PyTorch module (batch_first=False)."""
    # One cheap transpose so the in-kernel (B,S,E)->(B*S,E) flatten is free and
    # both attention blocks and LSTM timestep slabs are contiguous row ranges.
    src_bse = jnp.transpose(src, (1, 0, 2))                   # (B, S, E)
    out_pad = pl.pallas_call(
        fused_forward_kernel,
        out_shape=jax.ShapeDtypeStruct((SEQ, 128), jnp.float32),
    )(src_bse, wslab, cslab)
    return out_pad[:, :1]                                     # (S, 1)


if __name__ == "__main__":
    key = jax.random.PRNGKey(0)
    kp, kx = jax.random.split(key)
    params = init_params(kp)
    wslab, cslab = pack_params(params)          # once, outside the jitted path
    src = jax.random.normal(kx, (SEQ, BATCH, FEATURE_SIZE), jnp.float32)

    out = transam_lstm_forward(wslab, cslab, src)
    out = jax.block_until_ready(out)

    assert out.shape == (SEQ, 1), out.shape
    assert bool(jnp.all(jnp.isfinite(out)))
    print("KERNEL_OK")
</pallas_src>

<mosaic_0001>
module attributes {stable_mosaic.version = 11 : i64} {
  func.func @fused_forward_kernel(%arg0: memref<4x8x128xf32, #tpu.memory_space<vmem>>, %arg1: memref<1152x384xbf16, #tpu.memory_space<vmem>>, %arg2: memref<80x384xf32, #tpu.memory_space<vmem>>, %arg3: memref<8x128xf32, #tpu.memory_space<vmem>>) attributes {dimension_semantics = [], scalar_prefetch = 0 : i64, scratch_operands = 0 : i64, tpu.core_type = #tpu.core_type<tc>} {
    %c0 = arith.constant 0 : index
    %c0_0 = arith.constant 0 : index
    %c0_1 = arith.constant 0 : index
    %0 = vector.load %arg0[%c0, %c0_0, %c0_1] : memref<4x8x128xf32, #tpu.memory_space<vmem>>, vector<4x8x128xf32>
    %1 = vector.shape_cast %0 : vector<4x8x128xf32> to vector<32x128xf32>
    %c0_2 = arith.constant 0 : index
    %c0_3 = arith.constant 0 : index
    %2 = vector.load %arg2[%c0_2, %c0_3] : memref<80x384xf32, #tpu.memory_space<vmem>>, vector<32x128xf32>
    %3 = arith.addf %1, %2 : vector<32x128xf32>
    %4 = arith.truncf %3 : vector<32x128xf32> to vector<32x128xbf16>
    %c0_4 = arith.constant 0 : index
    %c0_5 = arith.constant 0 : index
    %5 = vector.load %arg1[%c0_4, %c0_5] : memref<1152x384xbf16, #tpu.memory_space<vmem>>, vector<128x384xbf16>
    %cst = arith.constant dense<0.000000e+00> : vector<32x384xf32>
    %6 = tpu.matmul %4, %5, %cst {dimension_numbers = #tpu.dot_dimension_numbers<[1], [0], [0], [1], [0, 0, 1, 1], [], []>} : vector<32x128xbf16>, vector<128x384xbf16>, vector<32x384xf32> -> vector<32x384xf32>
    %c66 = arith.constant 66 : index
    %c0_6 = arith.constant 0 : index
    %7 = vector.load %arg2[%c66, %c0_6] : memref<80x384xf32, #tpu.memory_space<vmem>>, vector<1x384xf32>
    %8 = vector.broadcast %7 : vector<1x384xf32> to vector<32x384xf32>
    %9 = arith.addf %6, %8 : vector<32x384xf32>
    %10 = vector.extract_strided_slice %9 {offsets = [0, 0], sizes = [32, 128], strides = [1, 1]} : vector<32x384xf32> to vector<32x128xf32>
    %cst_7 = arith.constant 1.250000e-01 : f32
    %11 = vector.broadcast %cst_7 : f32 to vector<32x128xf32>
    %12 = arith.mulf %10, %11 : vector<32x128xf32>
    %13 = vector.extract_strided_slice %9 {offsets = [0, 128], sizes = [32, 128], strides = [1, 1]} : vector<32x384xf32> to vector<32x128xf32>
    %14 = vector.extract_strided_slice %9 {offsets = [0, 256], sizes = [32, 128], strides = [1, 1]} : vector<32x384xf32> to vector<32x128xf32>
    %15 = arith.truncf %12 : vector<32x128xf32> to vector<32x128xbf16>
    %c32 = arith.constant 32 : index
    %c0_8 = arith.constant 0 : index
    %16 = vector.load %arg2[%c32, %c0_8] : memref<80x384xf32, #tpu.memory_space<vmem>>, vector<32x32xf32>
    %cst_9 = arith.constant 0.000000e+00 : f32
    %17 = vector.broadcast %cst_9 : f32 to vector<32x128xf32>
    %c64 = arith.constant 64 : index
    %c0_10 = arith.constant 0 : index
    %18 = vector.load %arg2[%c64, %c0_10] : memref<80x384xf32, #tpu.memory_space<vmem>>, vector<1x128xf32>
    %19 = vector.broadcast %18 : vector<1x128xf32> to vector<32x128xf32>
    %20 = arith.mulf %13, %19 : vector<32x128xf32>
    %21 = arith.truncf %20 : vector<32x128xf32> to vector<32x128xbf16>
    %22 = vector.broadcast %18 : vector<1x128xf32> to vector<32x128xf32>
    %23 = arith.mulf %14, %22 : vector<32x128xf32>
    %24 = arith.truncf %23 : vector<32x128xf32> to vector<32x128xbf16>
    %cst_11 = arith.constant dense<0.000000e+00> : vector<32x32xf32>
    %25 = tpu.matmul %15, %21, %cst_11 {dimension_numbers = #tpu.dot_dimension_numbers<[1], [1], [0], [0], [0, 0, 1, 0], [], []>} : vector<32x128xbf16>, vector<32x128xbf16>, vector<32x32xf32> -> vector<32x32xf32>
    %26 = arith.addf %25, %16 : vector<32x32xf32>
    %cst_12 = arith.constant dense<0xFF800000> : vector<32xf32>
    %27 = vector.multi_reduction <maximumf>, %26, %cst_12 [1] : vector<32x32xf32> to vector<32xf32>
    %28 = vector.shape_cast %27 : vector<32xf32> to vector<32x1xf32>
    %29 = vector.broadcast %28 : vector<32x1xf32> to vector<32x32xf32>
    %30 = arith.subf %26, %29 : vector<32x32xf32>
    %31 = math.exp %30 : vector<32x32xf32>
    %cst_13 = arith.constant dense<0.000000e+00> : vector<32xf32>
    %32 = vector.multi_reduction <add>, %31, %cst_13 [1] : vector<32x32xf32> to vector<32xf32>
    %33 = vector.shape_cast %32 : vector<32xf32> to vector<32x1xf32>
    %34 = tpu.reciprocal %33 {approx = true} : vector<32x1xf32> -> vector<32x1xf32>
    %35 = vector.broadcast %34 : vector<32x1xf32> to vector<32x32xf32>
    %36 = arith.mulf %31, %35 : vector<32x32xf32>
    %37 = arith.truncf %36 : vector<32x32xf32> to vector<32x32xbf16>
    %cst_14 = arith.constant dense<0.000000e+00> : vector<32x128xf32>
    %38 = tpu.matmul %37, %24, %cst_14 {dimension_numbers = #tpu.dot_dimension_numbers<[1], [0], [0], [1], [0, 0, 1, 1], [], []>} : vector<32x32xbf16>, vector<32x128xbf16>, vector<32x128xf32> -> vector<32x128xf32>
    %39 = arith.addf %17, %38 : vector<32x128xf32>
    %c65 = arith.constant 65 : index
    %c0_15 = arith.constant 0 : index
    %40 = vector.load %arg2[%c65, %c0_15] : memref<80x384xf32, #tpu.memory_space<vmem>>, vector<1x128xf32>
    %41 = vector.broadcast %40 : vector<1x128xf32> to vector<32x128xf32>
    %42 = arith.mulf %13, %41 : vector<32x128xf32>
    %43 = arith.truncf %42 : vector<32x128xf32> to vector<32x128xbf16>
    %44 = vector.broadcast %40 : vector<1x128xf32> to vector<32x128xf32>
    %45 = arith.mulf %14, %44 : vector<32x128xf32>
    %46 = arith.truncf %45 : vector<32x128xf32> to vector<32x128xbf16>
    %cst_16 = arith.constant dense<0.000000e+00> : vector<32x32xf32>
    %47 = tpu.matmul %15, %43, %cst_16 {dimension_numbers = #tpu.dot_dimension_numbers<[1], [1], [0], [0], [0, 0, 1, 0], [], []>} : vector<32x128xbf16>, vector<32x128xbf16>, vector<32x32xf32> -> vector<32x32xf32>
    %48 = arith.addf %47, %16 : vector<32x32xf32>
    %cst_17 = arith.constant dense<0xFF800000> : vector<32xf32>
    %49 = vector.multi_reduction <maximumf>, %48, %cst_17 [1] : vector<32x32xf32> to vector<32xf32>
    %50 = vector.shape_cast %49 : vector<32xf32> to vector<32x1xf32>
    %51 = vector.broadcast %50 : vector<32x1xf32> to vector<32x32xf32>
    %52 = arith.subf %48, %51 : vector<32x32xf32>
    %53 = math.exp %52 : vector<32x32xf32>
    %cst_18 = arith.constant dense<0.000000e+00> : vector<32xf32>
    %54 = vector.multi_reduction <add>, %53, %cst_18 [1] : vector<32x32xf32> to vector<32xf32>
    %55 = vector.shape_cast %54 : vector<32xf32> to vector<32x1xf32>
    %56 = tpu.reciprocal %55 {approx = true} : vector<32x1xf32> -> vector<32x1xf32>
    %57 = vector.broadcast %56 : vector<32x1xf32> to vector<32x32xf32>
    %58 = arith.mulf %53, %57 : vector<32x32xf32>
    %59 = arith.truncf %58 : vector<32x32xf32> to vector<32x32xbf16>
    %cst_19 = arith.constant dense<0.000000e+00> : vector<32x128xf32>
    %60 = tpu.matmul %59, %46, %cst_19 {dimension_numbers = #tpu.dot_dimension_numbers<[1], [0], [0], [1], [0, 0, 1, 1], [], []>} : vector<32x32xbf16>, vector<32x128xbf16>, vector<32x128xf32> -> vector<32x128xf32>
    %61 = arith.addf %39, %60 : vector<32x128xf32>
    %62 = arith.truncf %61 : vector<32x128xf32> to vector<32x128xbf16>
    %c128 = arith.constant 128 : index
    %c0_20 = arith.constant 0 : index
    %63 = vector.load %arg1[%c128, %c0_20] : memref<1152x384xbf16, #tpu.memory_space<vmem>>, vector<128x128xbf16>
    %cst_21 = arith.constant dense<0.000000e+00> : vector<32x128xf32>
    %64 = tpu.matmul %62, %63, %cst_21 {dimension_numbers = #tpu.dot_dimension_numbers<[1], [0], [0], [1], [0, 0, 1, 1], [], []>} : vector<32x128xbf16>, vector<128x128xbf16>, vector<32x128xf32> -> vector<32x128xf32>
    %c67 = arith.constant 67 : index
    %c0_22 = arith.constant 0 : index
    %65 = vector.load %arg2[%c67, %c0_22] : memref<80x384xf32, #tpu.memory_space<vmem>>, vector<1x128xf32>
    %66 = vector.broadcast %65 : vector<1x128xf32> to vector<32x128xf32>
    %67 = arith.addf %64, %66 : vector<32x128xf32>
    %68 = arith.addf %3, %67 : vector<32x128xf32>
    %c68 = arith.constant 68 : index
    %c0_23 = arith.constant 0 : index
    %69 = vector.load %arg2[%c68, %c0_23] : memref<80x384xf32, #tpu.memory_space<vmem>>, vector<1x128xf32>
    %c69 = arith.constant 69 : index
    %c0_24 = arith.constant 0 : index
    %70 = vector.load %arg2[%c69, %c0_24] : memref<80x384xf32, #tpu.memory_space<vmem>>, vector<1x128xf32>
    %cst_25 = arith.constant dense<0.000000e+00> : vector<32xf32>
    %71 = vector.multi_reduction <add>, %68, %cst_25 [1] : vector<32x128xf32> to vector<32xf32>
    %72 = vector.shape_cast %71 : vector<32xf32> to vector<32x1xf32>
    %cst_26 = arith.constant 1.280000e+02 : f32
    %73 = vector.broadcast %cst_26 : f32 to vector<32x1xf32>
    %74 = arith.divf %72, %73 : vector<32x1xf32>
    %75 = vector.broadcast %74 : vector<32x1xf32> to vector<32x128xf32>
    %76 = arith.subf %68, %75 : vector<32x128xf32>
    %77 = arith.mulf %76, %76 : vector<32x128xf32>
    %cst_27 = arith.constant dense<0.000000e+00> : vector<32xf32>
    %78 = vector.multi_reduction <add>, %77, %cst_27 [1] : vector<32x128xf32> to vector<32xf32>
    %79 = vector.shape_cast %78 : vector<32xf32> to vector<32x1xf32>
    %cst_28 = arith.constant 1.280000e+02 : f32
    %80 = vector.broadcast %cst_28 : f32 to vector<32x1xf32>
    %81 = arith.divf %79, %80 : vector<32x1xf32>
    %cst_29 = arith.constant 9.99999974E-6 : f32
    %82 = vector.broadcast %cst_29 : f32 to vector<32x1xf32>
    %83 = arith.addf %81, %82 : vector<32x1xf32>
    %84 = math.rsqrt %83 : vector<32x1xf32>
    %85 = vector.broadcast %84 : vector<32x1xf32> to vector<32x128xf32>
    %86 = arith.mulf %76, %85 : vector<32x128xf32>
    %87 = vector.broadcast %69 : vector<1x128xf32> to vector<32x128xf32>
    %88 = arith.mulf %86, %87 : vector<32x128xf32>
    %89 = vector.broadcast %70 : vector<1x128xf32> to vector<32x128xf32>
    %90 = arith.addf %88, %89 : vector<32x128xf32>
    %91 = arith.truncf %90 : vector<32x128xf32> to vector<32x128xbf16>
    %c256 = arith.constant 256 : index
    %c0_30 = arith.constant 0 : index
    %92 = vector.load %arg1[%c256, %c0_30] : memref<1152x384xbf16, #tpu.memory_space<vmem>>, vector<128x256xbf16>
    %cst_31 = arith.constant dense<0.000000e+00> : vector<32x256xf32>
    %93 = tpu.matmul %91, %92, %cst_31 {dimension_numbers = #tpu.dot_dimension_numbers<[1], [0], [0], [1], [0, 0, 1, 1], [], []>} : vector<32x128xbf16>, vector<128x256xbf16>, vector<32x256xf32> -> vector<32x256xf32>
    %c70 = arith.constant 70 : index
    %c0_32 = arith.constant 0 : index
    %94 = vector.load %arg2[%c70, %c0_32] : memref<80x384xf32, #tpu.memory_space<vmem>>, vector<1x256xf32>
    %95 = vector.broadcast %94 : vector<1x256xf32> to vector<32x256xf32>
    %96 = arith.addf %93, %95 : vector<32x256xf32>
    %cst_33 = arith.constant 0.000000e+00 : f32
    %97 = vector.broadcast %cst_33 : f32 to vector<32x256xf32>
    %98 = arith.maximumf %96, %97 : vector<32x256xf32>
    %99 = arith.truncf %98 : vector<32x256xf32> to vector<32x256xbf16>
    %c384 = arith.constant 384 : index
    %c0_34 = arith.constant 0 : index
    %100 = vector.load %arg1[%c384, %c0_34] : memref<1152x384xbf16, #tpu.memory_space<vmem>>, vector<256x128xbf16>
    %cst_35 = arith.constant dense<0.000000e+00> : vector<32x128xf32>
    %101 = tpu.matmul %99, %100, %cst_35 {dimension_numbers = #tpu.dot_dimension_numbers<[1], [0], [0], [1], [0, 0, 1, 1], [], []>} : vector<32x256xbf16>, vector<256x128xbf16>, vector<32x128xf32> -> vector<32x128xf32>
    %102 = arith.addf %90, %101 : vector<32x128xf32>
    %c71 = arith.constant 71 : index
    %c0_36 = arith.constant 0 : index
    %103 = vector.load %arg2[%c71, %c0_36] : memref<80x384xf32, #tpu.memory_space<vmem>>, vector<1x128xf32>
    %104 = vector.broadcast %103 : vector<1x128xf32> to vector<32x128xf32>
    %105 = arith.addf %102, %104 : vector<32x128xf32>
    %c72 = arith.constant 72 : index
    %c0_37 = arith.constant 0 : index
    %106 = vector.load %arg2[%c72, %c0_37] : memref<80x384xf32, #tpu.memory_space<vmem>>, vector<1x128xf32>
    %c73 = arith.constant 73 : index
    %c0_38 = arith.constant 0 : index
    %107 = vector.load %arg2[%c73, %c0_38] : memref<80x384xf32, #tpu.memory_space<vmem>>, vector<1x128xf32>
    %cst_39 = arith.constant dense<0.000000e+00> : vector<32xf32>
    %108 = vector.multi_reduction <add>, %105, %cst_39 [1] : vector<32x128xf32> to vector<32xf32>
    %109 = vector.shape_cast %108 : vector<32xf32> to vector<32x1xf32>
    %cst_40 = arith.constant 1.280000e+02 : f32
    %110 = vector.broadcast %cst_40 : f32 to vector<32x1xf32>
    %111 = arith.divf %109, %110 : vector<32x1xf32>
    %112 = vector.broadcast %111 : vector<32x1xf32> to vector<32x128xf32>
    %113 = arith.subf %105, %112 : vector<32x128xf32>
    %114 = arith.mulf %113, %113 : vector<32x128xf32>
    %cst_41 = arith.constant dense<0.000000e+00> : vector<32xf32>
    %115 = vector.multi_reduction <add>, %114, %cst_41 [1] : vector<32x128xf32> to vector<32xf32>
    %116 = vector.shape_cast %115 : vector<32xf32> to vector<32x1xf32>
    %cst_42 = arith.constant 1.280000e+02 : f32
    %117 = vector.broadcast %cst_42 : f32 to vector<32x1xf32>
    %118 = arith.divf %116, %117 : vector<32x1xf32>
    %cst_43 = arith.constant 9.99999974E-6 : f32
    %119 = vector.broadcast %cst_43 : f32 to vector<32x1xf32>
    %120 = arith.addf %118, %119 : vector<32x1xf32>
    %121 = math.rsqrt %120 : vector<32x1xf32>
    %122 = vector.broadcast %121 : vector<32x1xf32> to vector<32x128xf32>
    %123 = arith.mulf %113, %122 : vector<32x128xf32>
    %124 = vector.broadcast %106 : vector<1x128xf32> to vector<32x128xf32>
    %125 = arith.mulf %123, %124 : vector<32x128xf32>
    %126 = vector.broadcast %107 : vector<1x128xf32> to vector<32x128xf32>
    %127 = arith.addf %125, %126 : vector<32x128xf32>
    %128 = arith.truncf %127 : vector<32x128xf32> to vector<32x128xbf16>
    %c640 = arith.constant 640 : index
    %c0_44 = arith.constant 0 : index
    %129 = vector.load %arg1[%c640, %c0_44] : memref<1152x384xbf16, #tpu.memory_space<vmem>>, vector<128x128xbf16>
    %cst_45 = arith.constant dense<0.000000e+00> : vector<32x128xf32>
    %130 = tpu.matmul %128, %129, %cst_45 {dimension_numbers = #tpu.dot_dimension_numbers<[1], [0], [0], [1], [0, 0, 1, 1], [], []>} : vector<32x128xbf16>, vector<128x128xbf16>, vector<32x128xf32> -> vector<32x128xf32>
    %c74 = arith.constant 74 : index
    %c0_46 = arith.constant 0 : index
    %131 = vector.load %arg2[%c74, %c0_46] : memref<80x384xf32, #tpu.memory_space<vmem>>, vector<1x128xf32>
    %132 = vector.broadcast %131 : vector<1x128xf32> to vector<32x128xf32>
    %133 = arith.addf %130, %132 : vector<32x128xf32>
    %c75 = arith.constant 75 : index
    %c0_47 = arith.constant 0 : index
    %134 = vector.load %arg2[%c75, %c0_47] : memref<80x384xf32, #tpu.memory_space<vmem>>, vector<1x128xf32>
    %cst_48 = arith.constant 0.000000e+00 : f32
    %135 = vector.broadcast %cst_48 : f32 to vector<8x32xf32>
    %136 = tpu.concatenate %135, %135 in 1 : vector<8x32xf32>, vector<8x32xf32> -> vector<8x64xf32>
    %137 = arith.truncf %136 : vector<8x64xf32> to vector<8x64xbf16>
    %c768 = arith.constant 768 : index
    %c0_49 = arith.constant 0 : index
    %138 = vector.load %arg1[%c768, %c0_49] : memref<1152x384xbf16, #tpu.memory_space<vmem>>, vector<64x256xbf16>
    %cst_50 = arith.constant dense<0.000000e+00> : vector<8x256xf32>
    %139 = tpu.matmul %137, %138, %cst_50 {dimension_numbers = #tpu.dot_dimension_numbers<[1], [0], [0], [1], [0, 0, 1, 1], [], []>} : vector<8x64xbf16>, vector<64x256xbf16>, vector<8x256xf32> -> vector<8x256xf32>
    %140 = vector.extract_strided_slice %133 {offsets = [0, 0], sizes = [8, 128], strides = [1, 1]} : vector<32x128xf32> to vector<8x128xf32>
    %141 = vector.extract_strided_slice %139 {offsets = [0, 0], sizes = [8, 128], strides = [1, 1]} : vector<8x256xf32> to vector<8x128xf32>
    %142 = arith.addf %140, %141 : vector<8x128xf32>
    %143 = arith.negf %142 : vector<8x128xf32>
    %144 = math.exp %143 : vector<8x128xf32>
    %cst_51 = arith.constant 1.000000e+00 : f32
    %145 = vector.broadcast %cst_51 : f32 to vector<8x128xf32>
    %146 = arith.addf %145, %144 : vector<8x128xf32>
    %147 = arith.divf %145, %146 : vector<8x128xf32>
    %148 = vector.extract_strided_slice %147 {offsets = [0, 0], sizes = [8, 32], strides = [1, 1]} : vector<8x128xf32> to vector<8x32xf32>
    %149 = vector.extract_strided_slice %147 {offsets = [0, 32], sizes = [8, 32], strides = [1, 1]} : vector<8x128xf32> to vector<8x32xf32>
    %150 = vector.extract_strided_slice %147 {offsets = [0, 96], sizes = [8, 32], strides = [1, 1]} : vector<8x128xf32> to vector<8x32xf32>
    %151 = vector.extract_strided_slice %142 {offsets = [0, 64], sizes = [8, 32], strides = [1, 1]} : vector<8x128xf32> to vector<8x32xf32>
    %152 = math.tanh %151 : vector<8x32xf32>
    %153 = arith.mulf %149, %135 : vector<8x32xf32>
    %154 = arith.mulf %148, %152 : vector<8x32xf32>
    %155 = arith.addf %153, %154 : vector<8x32xf32>
    %156 = math.tanh %155 : vector<8x32xf32>
    %157 = arith.mulf %150, %156 : vector<8x32xf32>
    %158 = arith.truncf %157 : vector<8x32xf32> to vector<8x32xbf16>
    %c832 = arith.constant 832 : index
    %c0_52 = arith.constant 0 : index
    %159 = vector.load %arg1[%c832, %c0_52] : memref<1152x384xbf16, #tpu.memory_space<vmem>>, vector<32x128xbf16>
    %cst_53 = arith.constant dense<0.000000e+00> : vector<8x128xf32>
    %160 = tpu.matmul %158, %159, %cst_53 {dimension_numbers = #tpu.dot_dimension_numbers<[1], [0], [0], [1], [0, 0, 1, 1], [], []>} : vector<8x32xbf16>, vector<32x128xbf16>, vector<8x128xf32> -> vector<8x128xf32>
    %161 = vector.broadcast %134 : vector<1x128xf32> to vector<8x128xf32>
    %162 = arith.addf %160, %161 : vector<8x128xf32>
    %163 = vector.extract_strided_slice %139 {offsets = [0, 128], sizes = [8, 128], strides = [1, 1]} : vector<8x256xf32> to vector<8x128xf32>
    %164 = arith.addf %162, %163 : vector<8x128xf32>
    %165 = arith.negf %164 : vector<8x128xf32>
    %166 = math.exp %165 : vector<8x128xf32>
    %cst_54 = arith.constant 1.000000e+00 : f32
    %167 = vector.broadcast %cst_54 : f32 to vector<8x128xf32>
    %168 = arith.addf %167, %166 : vector<8x128xf32>
    %169 = arith.divf %167, %168 : vector<8x128xf32>
    %170 = vector.extract_strided_slice %169 {offsets = [0, 0], sizes = [8, 32], strides = [1, 1]} : vector<8x128xf32> to vector<8x32xf32>
    %171 = vector.extract_strided_slice %169 {offsets = [0, 32], sizes = [8, 32], strides = [1, 1]} : vector<8x128xf32> to vector<8x32xf32>
    %172 = vector.extract_strided_slice %169 {offsets = [0, 96], sizes = [8, 32], strides = [1, 1]} : vector<8x128xf32> to vector<8x32xf32>
    %173 = vector.extract_strided_slice %164 {offsets = [0, 64], sizes = [8, 32], strides = [1, 1]} : vector<8x128xf32> to vector<8x32xf32>
    %174 = math.tanh %173 : vector<8x32xf32>
    %175 = arith.mulf %171, %135 : vector<8x32xf32>
    %176 = arith.mulf %170, %174 : vector<8x32xf32>
    %177 = arith.addf %175, %176 : vector<8x32xf32>
    %178 = math.tanh %177 : vector<8x32xf32>
    %179 = arith.mulf %172, %178 : vector<8x32xf32>
    %180 = tpu.concatenate %157, %179 in 1 : vector<8x32xf32>, vector<8x32xf32> -> vector<8x64xf32>
    %181 = arith.truncf %180 : vector<8x64xf32> to vector<8x64xbf16>
    %c768_55 = arith.constant 768 : index
    %c0_56 = arith.constant 0 : index
    %182 = vector.load %arg1[%c768_55, %c0_56] : memref<1152x384xbf16, #tpu.memory_space<vmem>>, vector<64x256xbf16>
    %cst_57 = arith.constant dense<0.000000e+00> : vector<8x256xf32>
    %183 = tpu.matmul %181, %182, %cst_57 {dimension_numbers = #tpu.dot_dimension_numbers<[1], [0], [0], [1], [0, 0, 1, 1], [], []>} : vector<8x64xbf16>, vector<64x256xbf16>, vector<8x256xf32> -> vector<8x256xf32>
    %184 = vector.extract_strided_slice %133 {offsets = [8, 0], sizes = [8, 128], strides = [1, 1]} : vector<32x128xf32> to vector<8x128xf32>
    %185 = vector.extract_strided_slice %183 {offsets = [0, 0], sizes = [8, 128], strides = [1, 1]} : vector<8x256xf32> to vector<8x128xf32>
    %186 = arith.addf %184, %185 : vector<8x128xf32>
    %187 = arith.negf %186 : vector<8x128xf32>
    %188 = math.exp %187 : vector<8x128xf32>
    %cst_58 = arith.constant 1.000000e+00 : f32
    %189 = vector.broadcast %cst_58 : f32 to vector<8x128xf32>
    %190 = arith.addf %189, %188 : vector<8x128xf32>
    %191 = arith.divf %189, %190 : vector<8x128xf32>
    %192 = vector.extract_strided_slice %191 {offsets = [0, 0], sizes = [8, 32], strides = [1, 1]} : vector<8x128xf32> to vector<8x32xf32>
    %193 = vector.extract_strided_slice %191 {offsets = [0, 32], sizes = [8, 32], strides = [1, 1]} : vector<8x128xf32> to vector<8x32xf32>
    %194 = vector.extract_strided_slice %191 {offsets = [0, 96], sizes = [8, 32], strides = [1, 1]} : vector<8x128xf32> to vector<8x32xf32>
    %195 = vector.extract_strided_slice %186 {offsets = [0, 64], sizes = [8, 32], strides = [1, 1]} : vector<8x128xf32> to vector<8x32xf32>
    %196 = math.tanh %195 : vector<8x32xf32>
    %197 = arith.mulf %193, %155 : vector<8x32xf32>
    %198 = arith.mulf %192, %196 : vector<8x32xf32>
    %199 = arith.addf %197, %198 : vector<8x32xf32>
    %200 = math.tanh %199 : vector<8x32xf32>
    %201 = arith.mulf %194, %200 : vector<8x32xf32>
    %202 = arith.truncf %201 : vector<8x32xf32> to vector<8x32xbf16>
    %c832_59 = arith.constant 832 : index
    %c0_60 = arith.constant 0 : index
    %203 = vector.load %arg1[%c832_59, %c0_60] : memref<1152x384xbf16, #tpu.memory_space<vmem>>, vector<32x128xbf16>
    %cst_61 = arith.constant dense<0.000000e+00> : vector<8x128xf32>
    %204 = tpu.matmul %202, %203, %cst_61 {dimension_numbers = #tpu.dot_dimension_numbers<[1], [0], [0], [1], [0, 0, 1, 1], [], []>} : vector<8x32xbf16>, vector<32x128xbf16>, vector<8x128xf32> -> vector<8x128xf32>
    %205 = vector.broadcast %134 : vector<1x128xf32> to vector<8x128xf32>
    %206 = arith.addf %204, %205 : vector<8x128xf32>
    %207 = vector.extract_strided_slice %183 {offsets = [0, 128], sizes = [8, 128], strides = [1, 1]} : vector<8x256xf32> to vector<8x128xf32>
    %208 = arith.addf %206, %207 : vector<8x128xf32>
    %209 = arith.negf %208 : vector<8x128xf32>
    %210 = math.exp %209 : vector<8x128xf32>
    %cst_62 = arith.constant 1.000000e+00 : f32
    %211 = vector.broadcast %cst_62 : f32 to vector<8x128xf32>
    %212 = arith.addf %211, %210 : vector<8x128xf32>
    %213 = arith.divf %211, %212 : vector<8x128xf32>
    %214 = vector.extract_strided_slice %213 {offsets = [0, 0], sizes = [8, 32], strides = [1, 1]} : vector<8x128xf32> to vector<8x32xf32>
    %215 = vector.extract_strided_slice %213 {offsets = [0, 32], sizes = [8, 32], strides = [1, 1]} : vector<8x128xf32> to vector<8x32xf32>
    %216 = vector.extract_strided_slice %213 {offsets = [0, 96], sizes = [8, 32], strides = [1, 1]} : vector<8x128xf32> to vector<8x32xf32>
    %217 = vector.extract_strided_slice %208 {offsets = [0, 64], sizes = [8, 32], strides = [1, 1]} : vector<8x128xf32> to vector<8x32xf32>
    %218 = math.tanh %217 : vector<8x32xf32>
    %219 = arith.mulf %215, %177 : vector<8x32xf32>
    %220 = arith.mulf %214, %218 : vector<8x32xf32>
    %221 = arith.addf %219, %220 : vector<8x32xf32>
    %222 = math.tanh %221 : vector<8x32xf32>
    %223 = arith.mulf %216, %222 : vector<8x32xf32>
    %224 = tpu.concatenate %201, %223 in 1 : vector<8x32xf32>, vector<8x32xf32> -> vector<8x64xf32>
    %225 = arith.truncf %224 : vector<8x64xf32> to vector<8x64xbf16>
    %c768_63 = arith.constant 768 : index
    %c0_64 = arith.constant 0 : index
    %226 = vector.load %arg1[%c768_63, %c0_64] : memref<1152x384xbf16, #tpu.memory_space<vmem>>, vector<64x256xbf16>
    %cst_65 = arith.constant dense<0.000000e+00> : vector<8x256xf32>
    %227 = tpu.matmul %225, %226, %cst_65 {dimension_numbers = #tpu.dot_dimension_numbers<[1], [0], [0], [1], [0, 0, 1, 1], [], []>} : vector<8x64xbf16>, vector<64x256xbf16>, vector<8x256xf32> -> vector<8x256xf32>
    %228 = vector.extract_strided_slice %133 {offsets = [16, 0], sizes = [8, 128], strides = [1, 1]} : vector<32x128xf32> to vector<8x128xf32>
    %229 = vector.extract_strided_slice %227 {offsets = [0, 0], sizes = [8, 128], strides = [1, 1]} : vector<8x256xf32> to vector<8x128xf32>
    %230 = arith.addf %228, %229 : vector<8x128xf32>
    %231 = arith.negf %230 : vector<8x128xf32>
    %232 = math.exp %231 : vector<8x128xf32>
    %cst_66 = arith.constant 1.000000e+00 : f32
    %233 = vector.broadcast %cst_66 : f32 to vector<8x128xf32>
    %234 = arith.addf %233, %232 : vector<8x128xf32>
    %235 = arith.divf %233, %234 : vector<8x128xf32>
    %236 = vector.extract_strided_slice %235 {offsets = [0, 0], sizes = [8, 32], strides = [1, 1]} : vector<8x128xf32> to vector<8x32xf32>
    %237 = vector.extract_strided_slice %235 {offsets = [0, 32], sizes = [8, 32], strides = [1, 1]} : vector<8x128xf32> to vector<8x32xf32>
    %238 = vector.extract_strided_slice %235 {offsets = [0, 96], sizes = [8, 32], strides = [1, 1]} : vector<8x128xf32> to vector<8x32xf32>
    %239 = vector.extract_strided_slice %230 {offsets = [0, 64], sizes = [8, 32], strides = [1, 1]} : vector<8x128xf32> to vector<8x32xf32>
    %240 = math.tanh %239 : vector<8x32xf32>
    %241 = arith.mulf %237, %199 : vector<8x32xf32>
    %242 = arith.mulf %236, %240 : vector<8x32xf32>
    %243 = arith.addf %241, %242 : vector<8x32xf32>
    %244 = math.tanh %243 : vector<8x32xf32>
    %245 = arith.mulf %238, %244 : vector<8x32xf32>
    %246 = arith.truncf %245 : vector<8x32xf32> to vector<8x32xbf16>
    %c832_67 = arith.constant 832 : index
    %c0_68 = arith.constant 0 : index
    %247 = vector.load %arg1[%c832_67, %c0_68] : memref<1152x384xbf16, #tpu.memory_space<vmem>>, vector<32x128xbf16>
    %cst_69 = arith.constant dense<0.000000e+00> : vector<8x128xf32>
    %248 = tpu.matmul %246, %247, %cst_69 {dimension_numbers = #tpu.dot_dimension_numbers<[1], [0], [0], [1], [0, 0, 1, 1], [], []>} : vector<8x32xbf16>, vector<32x128xbf16>, vector<8x128xf32> -> vector<8x128xf32>
    %249 = vector.broadcast %134 : vector<1x128xf32> to vector<8x128xf32>
    %250 = arith.addf %248, %249 : vector<8x128xf32>
    %251 = vector.extract_strided_slice %227 {offsets = [0, 128], sizes = [8, 128], strides = [1, 1]} : vector<8x256xf32> to vector<8x128xf32>
    %252 = arith.addf %250, %251 : vector<8x128xf32>
    %253 = arith.negf %252 : vector<8x128xf32>
    %254 = math.exp %253 : vector<8x128xf32>
    %cst_70 = arith.constant 1.000000e+00 : f32
    %255 = vector.broadcast %cst_70 : f32 to vector<8x128xf32>
    %256 = arith.addf %255, %254 : vector<8x128xf32>
    %257 = arith.divf %255, %256 : vector<8x128xf32>
    %258 = vector.extract_strided_slice %257 {offsets = [0, 0], sizes = [8, 32], strides = [1, 1]} : vector<8x128xf32> to vector<8x32xf32>
    %259 = vector.extract_strided_slice %257 {offsets = [0, 32], sizes = [8, 32], strides = [1, 1]} : vector<8x128xf32> to vector<8x32xf32>
    %260 = vector.extract_strided_slice %257 {offsets = [0, 96], sizes = [8, 32], strides = [1, 1]} : vector<8x128xf32> to vector<8x32xf32>
    %261 = vector.extract_strided_slice %252 {offsets = [0, 64], sizes = [8, 32], strides = [1, 1]} : vector<8x128xf32> to vector<8x32xf32>
    %262 = math.tanh %261 : vector<8x32xf32>
    %263 = arith.mulf %259, %221 : vector<8x32xf32>
    %264 = arith.mulf %258, %262 : vector<8x32xf32>
    %265 = arith.addf %263, %264 : vector<8x32xf32>
    %266 = math.tanh %265 : vector<8x32xf32>
    %267 = arith.mulf %260, %266 : vector<8x32xf32>
    %268 = tpu.concatenate %245, %267 in 1 : vector<8x32xf32>, vector<8x32xf32> -> vector<8x64xf32>
    %269 = arith.truncf %268 : vector<8x64xf32> to vector<8x64xbf16>
    %c768_71 = arith.constant 768 : index
    %c0_72 = arith.constant 0 : index
    %270 = vector.load %arg1[%c768_71, %c0_72] : memref<1152x384xbf16, #tpu.memory_space<vmem>>, vector<64x256xbf16>
    %cst_73 = arith.constant dense<0.000000e+00> : vector<8x256xf32>
    %271 = tpu.matmul %269, %270, %cst_73 {dimension_numbers = #tpu.dot_dimension_numbers<[1], [0], [0], [1], [0, 0, 1, 1], [], []>} : vector<8x64xbf16>, vector<64x256xbf16>, vector<8x256xf32> -> vector<8x256xf32>
    %272 = vector.extract_strided_slice %133 {offsets = [24, 0], sizes = [8, 128], strides = [1, 1]} : vector<32x128xf32> to vector<8x128xf32>
    %273 = vector.extract_strided_slice %271 {offsets = [0, 0], sizes = [8, 128], strides = [1, 1]} : vector<8x256xf32> to vector<8x128xf32>
    %274 = arith.addf %272, %273 : vector<8x128xf32>
    %275 = arith.negf %274 : vector<8x128xf32>
    %276 = math.exp %275 : vector<8x128xf32>
    %cst_74 = arith.constant 1.000000e+00 : f32
    %277 = vector.broadcast %cst_74 : f32 to vector<8x128xf32>
    %278 = arith.addf %277, %276 : vector<8x128xf32>
    %279 = arith.divf %277, %278 : vector<8x128xf32>
    %280 = vector.extract_strided_slice %279 {offsets = [0, 0], sizes = [8, 32], strides = [1, 1]} : vector<8x128xf32> to vector<8x32xf32>
    %281 = vector.extract_strided_slice %279 {offsets = [0, 32], sizes = [8, 32], strides = [1, 1]} : vector<8x128xf32> to vector<8x32xf32>
    %282 = vector.extract_strided_slice %279 {offsets = [0, 96], sizes = [8, 32], strides = [1, 1]} : vector<8x128xf32> to vector<8x32xf32>
    %283 = vector.extract_strided_slice %274 {offsets = [0, 64], sizes = [8, 32], strides = [1, 1]} : vector<8x128xf32> to vector<8x32xf32>
    %284 = math.tanh %283 : vector<8x32xf32>
    %285 = arith.mulf %281, %243 : vector<8x32xf32>
    %286 = arith.mulf %280, %284 : vector<8x32xf32>
    %287 = arith.addf %285, %286 : vector<8x32xf32>
    %288 = math.tanh %287 : vector<8x32xf32>
    %289 = arith.mulf %282, %288 : vector<8x32xf32>
    %290 = arith.truncf %289 : vector<8x32xf32> to vector<8x32xbf16>
    %c832_75 = arith.constant 832 : index
    %c0_76 = arith.constant 0 : index
    %291 = vector.load %arg1[%c832_75, %c0_76] : memref<1152x384xbf16, #tpu.memory_space<vmem>>, vector<32x128xbf16>
    %cst_77 = arith.constant dense<0.000000e+00> : vector<8x128xf32>
    %292 = tpu.matmul %290, %291, %cst_77 {dimension_numbers = #tpu.dot_dimension_numbers<[1], [0], [0], [1], [0, 0, 1, 1], [], []>} : vector<8x32xbf16>, vector<32x128xbf16>, vector<8x128xf32> -> vector<8x128xf32>
    %293 = vector.broadcast %134 : vector<1x128xf32> to vector<8x128xf32>
    %294 = arith.addf %292, %293 : vector<8x128xf32>
    %295 = vector.extract_strided_slice %271 {offsets = [0, 128], sizes = [8, 128], strides = [1, 1]} : vector<8x256xf32> to vector<8x128xf32>
    %296 = arith.addf %294, %295 : vector<8x128xf32>
    %297 = arith.negf %296 : vector<8x128xf32>
    %298 = math.exp %297 : vector<8x128xf32>
    %cst_78 = arith.constant 1.000000e+00 : f32
    %299 = vector.broadcast %cst_78 : f32 to vector<8x128xf32>
    %300 = arith.addf %299, %298 : vector<8x128xf32>
    %301 = arith.divf %299, %300 : vector<8x128xf32>
    %302 = vector.extract_strided_slice %301 {offsets = [0, 0], sizes = [8, 32], strides = [1, 1]} : vector<8x128xf32> to vector<8x32xf32>
    %303 = vector.extract_strided_slice %301 {offsets = [0, 32], sizes = [8, 32], strides = [1, 1]} : vector<8x128xf32> to vector<8x32xf32>
    %304 = vector.extract_strided_slice %301 {offsets = [0, 96], sizes = [8, 32], strides = [1, 1]} : vector<8x128xf32> to vector<8x32xf32>
    %305 = vector.extract_strided_slice %296 {offsets = [0, 64], sizes = [8, 32], strides = [1, 1]} : vector<8x128xf32> to vector<8x32xf32>
    %306 = math.tanh %305 : vector<8x32xf32>
    %307 = arith.mulf %303, %265 : vector<8x32xf32>
    %308 = arith.mulf %302, %306 : vector<8x32xf32>
    %309 = arith.addf %307, %308 : vector<8x32xf32>
    %310 = math.tanh %309 : vector<8x32xf32>
    %311 = arith.mulf %304, %310 : vector<8x32xf32>
    %312 = arith.truncf %311 : vector<8x32xf32> to vector<8x32xbf16>
    %c864 = arith.constant 864 : index
    %c0_79 = arith.constant 0 : index
    %313 = vector.load %arg1[%c864, %c0_79] : memref<1152x384xbf16, #tpu.memory_space<vmem>>, vector<32x256xbf16>
    %cst_80 = arith.constant dense<0.000000e+00> : vector<8x256xf32>
    %314 = tpu.matmul %312, %313, %cst_80 {dimension_numbers = #tpu.dot_dimension_numbers<[1], [0], [0], [1], [0, 0, 1, 1], [], []>} : vector<8x32xbf16>, vector<32x256xbf16>, vector<8x256xf32> -> vector<8x256xf32>
    %c76 = arith.constant 76 : index
    %c0_81 = arith.constant 0 : index
    %315 = vector.load %arg2[%c76, %c0_81] : memref<80x384xf32, #tpu.memory_space<vmem>>, vector<1x256xf32>
    %316 = vector.broadcast %315 : vector<1x256xf32> to vector<8x256xf32>
    %317 = arith.addf %314, %316 : vector<8x256xf32>
    %318 = arith.truncf %317 : vector<8x256xf32> to vector<8x256xbf16>
    %c896 = arith.constant 896 : index
    %c0_82 = arith.constant 0 : index
    %319 = vector.load %arg1[%c896, %c0_82] : memref<1152x384xbf16, #tpu.memory_space<vmem>>, vector<256x128xbf16>
    %cst_83 = arith.constant dense<0.000000e+00> : vector<8x128xf32>
    %320 = tpu.matmul %318, %319, %cst_83 {dimension_numbers = #tpu.dot_dimension_numbers<[1], [0], [0], [1], [0, 0, 1, 1], [], []>} : vector<8x256xbf16>, vector<256x128xbf16>, vector<8x128xf32> -> vector<8x128xf32>
    %c77 = arith.constant 77 : index
    %c0_84 = arith.constant 0 : index
    %321 = vector.load %arg2[%c77, %c0_84] : memref<80x384xf32, #tpu.memory_space<vmem>>, vector<1x128xf32>
    %322 = vector.broadcast %321 : vector<1x128xf32> to vector<8x128xf32>
    %323 = arith.addf %320, %322 : vector<8x128xf32>
    %c0_85 = arith.constant 0 : index
    %c0_86 = arith.constant 0 : index
    %324 = vector.load %arg3[%c0_85, %c0_86] : memref<8x128xf32, #tpu.memory_space<vmem>>, vector<8x128xf32>
    tpu.vector_store %arg3[%c0_85, %c0_86], %323 {strides = array<i32>} : memref<8x128xf32, #tpu.memory_space<vmem>>, vector<8x128xf32>,
    return
  }
}

</mosaic_0001>

<bundles_post_ra>
// kernel: transam_lstm_forward.1
= control target key start
LH: loop header
LB: loop body
LE: loop exit
PB: predicated region body
PF: predicated region fallthrough
CT: control target
= control target key end

     0   :  { %8 = vsyncpa [#allocation3], 0  ;;  %s3140_s0 = inlined_call_operand.vmem [shape: f32[4,8,128], index: 0, kind: input, shape index: {}]   ;;  %s3141_s1 = inlined_call_operand.hbm [shape: bf16[1152,384], index: 1, kind: input, shape index: {}]   ;;  %s3142_s2 = inlined_call_operand.hbm [shape: f32[80,384], index: 2, kind: input, shape index: {}]   ;;  %s3143_s3 = inlined_call_operand.vmem [shape: f32[8,128], index: 3, kind: output, shape index: {}]  }
   0x1   :  { %s16_s14 = sshll.u32 %s3141_s1, 4  ;;  %s17_s14 = int_to_ptr.hbm [resolvable:$true] %s16_s14 }
   0x2   :  { %9 = vsyncpa [#allocation5], 0  ;;  %s2732_s15 = smov [#allocation2]   ;;  %s29_s19 = sshll.u32 %s3142_s2, 4  ;;  %s30_s19 = int_to_ptr.hbm [resolvable:$true] %s29_s19 }
   0x3   :  { %s18_s16 = sshll.u32 %s2732_s15, 4  ;;  %s2733_s20 = smov 192   ;;  %s19_s16 = int_to_ptr.vmem [resolvable:$true] %s18_s16 }
   0x4   :  { %s2734_s21 = smov 12   ;;  %s2735_s22 = smov [#allocation4]  }
   0x5   :  { %24 = dma.hbm_to_vmem [thread:$0]  %s17_s14, 27648, %s19_s16, [#allocation3], %s2733_s20, %s2733_s20, %s2734_s21  }
   0x6   :  { %s31_s23 = sshll.u32 %s2735_s22, 4  ;;  %s2736_s24 = smov 384   ;;  %s32_s23 = int_to_ptr.vmem [resolvable:$true] %s31_s23 }
   0x7   :  { %s2737_s25 = smov 24  }
   0x8   :  { %37 = dma.hbm_to_vmem [thread:$0]  %s30_s19, 3840, %s32_s23, [#allocation5], %s2736_s24, %s2736_s24, %s2737_s25  }
   0x9   :  { %2728 = dma.done.wait [#allocation3], 27648  }
   0xa   :  { %2729 = vsyncadd [#allocation3], 4294939648 }
   0xb   :  { %2730 = dma.done.wait [#allocation5], 3840  }
   0xc   :  { %2731 = vsyncadd [#allocation5], 4294963456  ;;  %v2475_v0 = vld [vmem:[#allocation2 + $0xac] sm:$0xf]  ;;  %v2110_v1 = vld [vmem:[#allocation2 + $0xb4] sm:$0xf0] }
   0xd   :  { %v2472_v2 = vld [vmem:[#allocation2 + $0x94] sm:$0xf]  ;;  %v2113_v3 = vor.u32 %v2475_v0, %v2110_v1  ;;  %v2098_v4 = vld [vmem:[#allocation2 + $0x9c] sm:$0xf0]  ;;  %v2469_v6 = vld [vmem:[#allocation2 + $0x7c] sm:$0xf] }
   0xe   :  { %v2101_v5 = vor.u32 %v2472_v2, %v2098_v4  ;;  %v2086_v7 = vld [vmem:[#allocation2 + $0x84] sm:$0xf0]  ;;  %v2476_v9 = vld [vmem:[#allocation2 + $0xb0] sm:$0xf0]  ;;  %v2096_v11 = vld [vmem:[#allocation2 + $0x90] sm:$0xf] }
   0xf   :  { %249 = vmatpush.bf16.msra.mxu1 %v2113_v3  ;;  %v2108_v8 = vld [vmem:[#allocation2 + $0xa8] sm:$0xf]  ;;  %v2473_v12 = vld [vmem:[#allocation2 + $0x98] sm:$0xf0]  ;;  %v2089_v13 = vor.u32 %v2469_v6, %v2086_v7  ;;  %v2466_v14 = vld [vmem:[#allocation2 + $0x64] sm:$0xf] }
  0x10   :  { %v2109_v10 = vor.u32 %v2476_v9, %v2108_v8  ;;  %v2097_v15 = vor.u32 %v2473_v12, %v2096_v11  ;;  %v2074_v16 = vld [vmem:[#allocation2 + $0x6c] sm:$0xf0]  ;;  %v2084_v17 = vld [vmem:[#allocation2 + $0x78] sm:$0xf]  ;;  %v2470_v18 = vld [vmem:[#allocation2 + $0x80] sm:$0xf0] }
  0x11   :  { %v2077_v19 = vor.u32 %v2466_v14, %v2074_v16  ;;  %v2463_v20 = vld [vmem:[#allocation2 + $0x4c] sm:$0xf]  ;;  %v2085_v21 = vor.u32 %v2470_v18, %v2084_v17  ;;  %v2062_v22 = vld [vmem:[#allocation2 + $0x54] sm:$0xf0]  ;;  %v2072_v23 = vld [vmem:[#allocation2 + $0x60] sm:$0xf] }
  0x12   :  { %230 = vmatpush.bf16.msra.mxu0 %v2109_v10  ;;  %v2467_v24 = vld [vmem:[#allocation2 + $0x68] sm:$0xf0]  ;;  %v2065_v25 = vor.u32 %v2463_v20, %v2062_v22  ;;  %v2460_v26 = vld [vmem:[#allocation2 + $0x34] sm:$0xf]  ;;  %v2050_v28 = vld [vmem:[#allocation2 + $0x3c] sm:$0xf0] }
  0x13   :  { %250 = vmatpush.bf16.msra.mxu1 %v2101_v5  ;;  %v2073_v27 = vor.u32 %v2467_v24, %v2072_v23  ;;  %v2060_v29 = vld [vmem:[#allocation2 + $0x48] sm:$0xf]  ;;  %v2464_v30 = vld [vmem:[#allocation2 + $0x50] sm:$0xf0]  ;;  %v2053_v31 = vor.u32 %v2460_v26, %v2050_v28  ;;  %v2457_v32 = vld [vmem:[#allocation2 + $0x1c] sm:$0xf] }
  0x14   :  { %v2061_v33 = vor.u32 %v2464_v30, %v2060_v29  ;;  %v2038_v34 = vld [vmem:[#allocation2 + $0x24] sm:$0xf0]  ;;  %v2048_v35 = vld [vmem:[#allocation2 + $0x30] sm:$0xf]  ;;  %v2461_v36 = vld [vmem:[#allocation2 + $0x38] sm:$0xf0] }
  0x15   :  { %v2454_v37 = vld [vmem:[#allocation2 + $0x4] sm:$0xf]  ;;  %v2041_v39 = vor.u32 %v2457_v32, %v2038_v34  ;;  %v48_v40 = vld [vmem:[%s3140_s0 + $0x8] sm:$0xff]  ;;  %v52_v42 = vld [vmem:[#allocation4 + $0x18] sm:$0xff]  ;;  %v2049_v43 = vor.u32 %v2461_v36, %v2048_v35  ;;  %vm329_vm0 = vcmask 261120   ;;  %s2741_s5 = smov 32  }
  0x16   :  { %231 = vmatpush.bf16.msra.mxu0 %v2097_v15  ;;  %v47_v38 = vld [vmem:[%s3140_s0] sm:$0xff]  ;;  %v2026_v44 = vld [vmem:[#allocation2 + $0xc] sm:$0xf0]  ;;  %v2036_v45 = vld [vmem:[#allocation2 + $0x18] sm:$0xf]  ;;  %v2776_v48 = vadd.f32 %v52_v42, %v48_v40 }
  0x17   :  { %251 = vmatpush.bf16.msra.mxu1 %v2089_v13  ;;  %v51_v41 = vld [vmem:[#allocation4] sm:$0xff]  ;;  %v2029_v49 = vor.u32 %v2454_v37, %v2026_v44  ;;  %v2455_v52 = vld [vmem:[#allocation2 + $0x8] sm:$0xf0]  ;;  %v49_v55 = vld [vmem:[%s3140_s0 + $0x10] sm:$0xff] }
  0x18   :  { %v2458_v46 = vld [vmem:[#allocation2 + $0x20] sm:$0xf0]  ;;  %v2774_v47 = vadd.f32 %v51_v41, %v47_v38  ;;  %v2024_v51 = vld [vmem:[#allocation2] sm:$0xf]  ;;  %v50_v56 = vld [vmem:[%s3140_s0 + $0x18] sm:$0xff]  ;;  %s2740_s0 = smov 64  }
  0x19   :  { %v2037_v50 = vor.u32 %v2458_v46, %v2036_v45  ;;  %v2025_v54 = vor.u32 %v2455_v52, %v2024_v51  ;;  %v53_v57 = vld [vmem:[#allocation4 + $0x30] sm:$0xff]  ;;  %v54_v58 = vld [vmem:[#allocation4 + $0x48] sm:$0xff]  ;;  %v2803_v7 = vld [vmem:[#allocation4 + $0xc0] ss:$0 sm:$0xff] }
  0x1a   :  { %232 = vmatpush.bf16.msra.mxu0 %v2085_v21  ;;  %v2780_v53 = vpack.c.bf16 %v2776_v48, %v2774_v47  ;;  %v2790_v59 = vadd.f32 %v53_v57, %v49_v55  ;;  %v2792_v60 = vadd.f32 %v54_v58, %v50_v56  ;;  %v2800_v1 = vld [vmem:[#allocation4 + $0xc2] ss:$8 sm:$0x7]  ;;  %v2808_v15 = vld [vmem:[#allocation4 + $0xc1] ss:$0 sm:$0xff]  ;;  %v294_v41 = vld [vmem:[#allocation4 + $0x78] sm:$0xff] }
  0x1b   :  { %252 = vmatpush.bf16.msra.mxu1 %v2077_v19  ;;  %v97_v3 = vperm.slane %v2800_v1, 1  ;;  %v96_v14 = vperm.slane %v2800_v1, 0  ;;  %v293_v37 = vld [vmem:[#allocation4 + $0x60] sm:$0xff]  ;;  %v2116_v45 = vld [vmem:[#allocation2 + $0xb0] sm:$0xf] }
  0x1c   :  { %v2796_v61 = vpack.c.bf16 %v2792_v60, %v2790_v59  ;;  %v2477_v46 = vld [vmem:[#allocation2 + $0xb8] sm:$0xf0]  ;;  %v2104_v51 = vld [vmem:[#allocation2 + $0x98] sm:$0xf]  ;;  %v2474_v52 = vld [vmem:[#allocation2 + $0xa0] sm:$0xf0] }
  0x1d   :  { %v2105_v55 = vor.u32 %v2474_v52, %v2104_v51  ;;  %v2471_v56 = vld [vmem:[#allocation2 + $0x88] sm:$0xf0] }
  0x1e   :  { %233 = vmatpush.bf16.msra.mxu0 %v2073_v27 }
  0x1f   :  { %253 = vmatpush.bf16.msra.mxu1 %v2065_v25 }
  0x22   :  { %234 = vmatpush.bf16.msra.mxu0 %v2061_v33 }
  0x23   :  { %254 = vmatpush.bf16.msra.mxu1 %v2053_v31 }
  0x26   :  { %235 = vmatpush.bf16.msra.mxu0 %v2049_v43 }
  0x27   :  { %255 = vmatpush.bf16.msra.mxu1 %v2041_v39 }
  0x2a   :  { %236 = vmatpush.bf16.msra.mxu0 %v2037_v50 }
  0x2b   :  { %256 = vmatpush.bf16.msra.mxu1 %v2029_v49  ;;  %v2117_v49 = vor.u32 %v2477_v46, %v2116_v45 }
  0x2d   :  { %268 = vmatpush.bf16.msra.mxu2 %v2117_v49 }
  0x2e   :  { %257 = vmatmul.bf16.vlgmr.msra.gmra.mxu1 %v2780_v53  ;;  %237 = vmatpush.bf16.msra.mxu0 %v2025_v54  ;;  %v2092_v54 = vld [vmem:[#allocation2 + $0x80] sm:$0xf] }
  0x2f   :  { %v2093_v57 = vor.u32 %v2471_v56, %v2092_v54 }
  0x31   :  { %238 = vmatmul.bf16.vlgmr.msra.gmra.mxu0 %v2780_v53  ;;  %269 = vmatpush.bf16.msra.mxu2 %v2105_v55 }
  0x35   :  { %270 = vmatpush.bf16.msra.mxu2 %v2093_v57 }
  0x3e   :  { %262 = vmatmul.bf16.gmra.mxu1 %v2796_v61 }
  0x41   :  { %243 = vmatmul.bf16.gmra.mxu0 %v2796_v61 }
  0xab   :  { %v258_v62 = vpop.f32.mrf.mxu1 }
  0xac   :  { %v259_v13 = vadd.f32 %v258_v62, %v97_v3  ;;  %v2080_v62 = vld [vmem:[#allocation2 + $0x68] sm:$0xf] }
  0xae   :  { %v239_v2 = vpop.f32.mrf.mxu0  ;;  %v298_v18 = vmul.f32 %v2803_v7, %v259_v13  ;;  %v377_v28 = vmul.f32 %v2808_v15, %v259_v13 }
  0xaf   :  { %v240_v20 = vadd.f32 %v239_v2, %v96_v14 }
  0xb1   :  { %v287_v25 = vmul.f32 0.125, %v240_v20 }
  0xb3   :  { %v260_v63 = vpop.f32.mrf.mxu1 }
  0xb4   :  { %v261_v10 = vadd.f32 %v260_v63, %v97_v3  ;;  %v2468_v63 = vld [vmem:[#allocation2 + $0x70] sm:$0xf0] }
  0xb5   :  { %v2081_v2 = vor.u32 %v2468_v63, %v2080_v62 }
  0xb6   :  { %v241_v11 = vpop.f32.mrf.mxu0  ;;  %v299_v16 = vmul.f32 %v2803_v7, %v261_v10  ;;  %v378_v27 = vmul.f32 %v2808_v15, %v261_v10 }
  0xb7   :  { %v242_v21 = vadd.f32 %v241_v11, %v96_v14  ;;  %271 = vmatpush.bf16.msra.mxu2 %v2081_v2  ;;  %v2044_v11 = vld [vmem:[#allocation2 + $0x20] sm:$0xf] }
  0xb8   :  { %v302_v22 = vpack.c.bf16 %v299_v16, %v298_v18  ;;  %v381_v30 = vpack.c.bf16 %v378_v27, %v377_v28  ;;  %v2032_v16 = vld [vmem:[#allocation2 + $0x8] sm:$0xf] }
  0xb9   :  { %v288_v26 = vmul.f32 0.125, %v242_v21 }
  0xbb   :  { %v263_v0 = vpop.f32.mrf.mxu1  ;;  %v291_v29 = vpack.c.bf16 %v288_v26, %v287_v25 }
  0xbc   :  { %v264_v4 = vadd.f32 %v263_v0, %v97_v3  ;;  %v2068_v0 = vld [vmem:[#allocation2 + $0x50] sm:$0xf] }
  0xbe   :  { %v300_v8 = vmul.f32 %v2803_v7, %v264_v4  ;;  %v379_v19 = vmul.f32 %v2808_v15, %v264_v4  ;;  %v244_v24 = vpop.f32.mrf.mxu0 }
  0xbf   :  { %v245_v32 = vadd.f32 %v244_v24, %v96_v14 }
  0xc1   :  { %v289_v34 = vmul.f32 0.125, %v245_v32 }
  0xc3   :  { %v265_v5 = vpop.f32.mrf.mxu1 }
  0xc4   :  { %v266_v6 = vadd.f32 %v265_v5, %v97_v3  ;;  %v2465_v3 = vld [vmem:[#allocation2 + $0x58] sm:$0xf0]  ;;  %v2056_v5 = vld [vmem:[#allocation2 + $0x38] sm:$0xf] }
  0xc5   :  { %v2069_v4 = vor.u32 %v2465_v3, %v2068_v0 }
  0xc6   :  { %v301_v9 = vmul.f32 %v2803_v7, %v266_v6  ;;  %v380_v17 = vmul.f32 %v2808_v15, %v266_v6  ;;  %v246_v31 = vpop.f32.mrf.mxu0  ;;  %v2462_v6 = vld [vmem:[#allocation2 + $0x40] sm:$0xf0] }
  0xc7   :  { %v247_v33 = vadd.f32 %v246_v31, %v96_v14  ;;  %272 = vmatpush.bf16.msra.mxu2 %v2069_v4 }
  0xc8   :  { %v303_v12 = vpack.c.bf16 %v301_v9, %v300_v8  ;;  %v382_v23 = vpack.c.bf16 %v380_v17, %v379_v19  ;;  %v2057_v9 = vor.u32 %v2462_v6, %v2056_v5  ;;  %v2456_v17 = vld [vmem:[#allocation2 + $0x10] sm:$0xf0] }
  0xc9   :  { %v290_v35 = vmul.f32 0.125, %v247_v33  ;;  %v2033_v19 = vor.u32 %v2456_v17, %v2032_v16 }
  0xca   :  { %316 = vmatpush.bf16.xpose.msra.mxu3 %v303_v12  ;;  %v2459_v12 = vld [vmem:[#allocation2 + $0x28] sm:$0xf0] }
  0xcb   :  { %v292_v36 = vpack.c.bf16 %v290_v35, %v289_v34  ;;  %273 = vmatpush.bf16.msra.mxu2 %v2057_v9  ;;  %v2045_v14 = vor.u32 %v2459_v12, %v2044_v11  ;;  %v296_v35 = vld [vmem:[#allocation4 + $0xa8] sm:$0xff] }
  0xcf   :  { %274 = vmatpush.bf16.msra.mxu2 %v2045_v14 }
  0xd2   :  { %317 = vmatpush.bf16.xpose.msra.mxu3 %v302_v22 }
  0xd3   :  { %275 = vmatpush.bf16.msra.mxu2 %v2033_v19 }
  0xd6   :  { %276 = vmatmul.bf16.vlgmr.msra.gmra.mxu2 %v2780_v53 }
  0xd9   :  { %318 = vmatmul.bf16.vlgmr.msra.gmra.mxu3 %v291_v29 }
  0xda   :  { %395 = vmatpush.bf16.xpose.msrb.mxu3 %v382_v23 }
  0xe2   :  { %396 = vmatpush.bf16.xpose.msrb.mxu3 %v381_v30 }
  0xe6   :  { %281 = vmatmul.bf16.gmra.mxu2 %v2796_v61  ;;  %v295_v61 = vld [vmem:[#allocation4 + $0x90] sm:$0xff] }
  0xe9   :  { %323 = vmatmul.bf16.gmra.mxu3 %v292_v36 }
  0xf9   :  { %397 = vmatmul.bf16.vlgmr.msrb.gmra.mxu3 %v291_v29 }
 0x109   :  { %402 = vmatmul.bf16.gmra.mxu3 %v292_v36 }
 0x159   :  { %v277_v54 = vpop.f32.mrf.mxu2 }
 0x15c   :  { %v319_v38 = vpop.f32.mrf.mxu3 }
 0x15d   :  { %v320_v39 = vadd.f32 %v319_v38, %v293_v37 }
 0x15f   :  { %v330_v40 = vsel %vm329_vm0, %v320_v39, -inf }
 0x160   :  { %331 = vmax.xlane.f32.xlu0 %v330_v40 }
 0x161   :  { %v279_v56 = vpop.f32.mrf.mxu2 }
 0x164   :  { %v321_v42 = vpop.f32.mrf.mxu3 }
 0x165   :  { %v322_v43 = vadd.f32 %v321_v42, %v294_v41 }
 0x167   :  { %v333_v44 = vsel %vm329_vm0, %v322_v43, -inf }
 0x168   :  { %334 = vmax.xlane.f32.xlu0 %v333_v44 }
 0x169   :  { %v282_v57 = vpop.f32.mrf.mxu2 }
 0x16c   :  { %v324_v50 = vpop.f32.mrf.mxu3 }
 0x16d   :  { %v2832_v32 = vadd.f32 %v324_v50, %v295_v61 }
 0x16f   :  { %v336_v33 = vsel %vm329_vm0, %v2832_v32, -inf }
 0x171   :  { %v284_v2 = vpop.f32.mrf.mxu2 }
 0x174   :  { %v2818_v58 = vpop.f32.mrf.mxu3 }
 0x175   :  { %v2845_v46 = vadd.f32 %v2818_v58, %v296_v35  ;;  %v98_v58 = vperm.slane %v2800_v1, 2 }
 0x177   :  { %v339_v51 = vsel %vm329_vm0, %v2845_v46, -inf  ;;  %v283_v62 = vadd.f32 %v282_v57, %v98_v58  ;;  %v278_v63 = vadd.f32 %v277_v54, %v98_v58  ;;  %v280_v0 = vadd.f32 %v279_v56, %v98_v58  ;;  %v2148_v54 = vld [vmem:[#allocation2 + $0x150] sm:$0xf]  ;;  %v2144_v56 = vld [vmem:[#allocation2 + $0x138] sm:$0xf] }
 0x178   :  { %v285_v5 = vadd.f32 %v284_v2, %v98_v58  ;;  %v2483_v57 = vld [vmem:[#allocation2 + $0x140] sm:$0xf0] }
 0x179   :  { %v306_v3 = vmul.f32 %v2803_v7, %v283_v62  ;;  %v385_v4 = vmul.f32 %v2808_v15, %v283_v62  ;;  %v304_v6 = vmul.f32 %v2803_v7, %v278_v63  ;;  %v305_v9 = vmul.f32 %v2803_v7, %v280_v0  ;;  %v2140_v62 = vld [vmem:[#allocation2 + $0x120] sm:$0xf] }
 0x17a   :  { %v307_v11 = vmul.f32 %v2803_v7, %v285_v5  ;;  %v386_v1 = vmul.f32 %v2808_v15, %v285_v5  ;;  %v2145_v58 = vor.u32 %v2483_v57, %v2144_v56  ;;  %v2132_v5 = vld [vmem:[#allocation2 + $0xf0] sm:$0xf] }
 0x17b   :  { %v308_v16 = vpack.c.bf16 %v305_v9, %v304_v6  ;;  %v2480_v6 = vld [vmem:[#allocation2 + $0xf8] sm:$0xf0]  ;;  %v2128_v9 = vld [vmem:[#allocation2 + $0xd8] sm:$0xf] }
 0x17c   :  { %v398_v8 = vpop.f32.mrf.mxu3  ;;  %v388_v12 = vpack.c.bf16 %v386_v1, %v385_v4  ;;  %v2124_v1 = vld [vmem:[#allocation2 + $0xc0] sm:$0xf] }
 0x17d   :  { %v399_v10 = vadd.f32 %v398_v8, %v293_v37  ;;  %v383_v8 = vmul.f32 %v2808_v15, %v278_v63  ;;  %v2482_v63 = vld [vmem:[#allocation2 + $0x128] sm:$0xf0] }
 0x17e   :  { %466 = vmatpush.bf16.msrb.mxu0 %v388_v12  ;;  %v2141_v2 = vor.u32 %v2482_v63, %v2140_v62  ;;  %v2478_v12 = vld [vmem:[#allocation2 + $0xc8] sm:$0xf0] }
 0x17f   :  { %v408_v13 = vsel %vm329_vm0, %v399_v10, -inf }
 0x180   :  { %409 = vmax.xlane.f32.xlu1 %v408_v13  ;;  %v309_v13 = vpack.c.bf16 %v307_v11, %v306_v3  ;;  %v2481_v3 = vld [vmem:[#allocation2 + $0x110] sm:$0xf0] }
 0x182   :  { %491 = vmatpush.bf16.msrb.mxu1 %v309_v13  ;;  %v2125_v13 = vor.u32 %v2478_v12, %v2124_v1  ;;  %v2214_v12 = vld [vmem:[#allocation2 + $0x234] sm:$0xf0] }
 0x184   :  { %v400_v18 = vpop.f32.mrf.mxu3 }
 0x185   :  { %v401_v20 = vadd.f32 %v400_v18, %v294_v41 }
 0x186   :  { %492 = vmatpush.bf16.msrb.mxu1 %v308_v16 }
 0x187   :  { %v411_v21 = vsel %vm329_vm0, %v401_v20, -inf }
 0x188   :  { %412 = vmax.xlane.f32.xlu1 %v411_v21 }
 0x18c   :  { %v403_v31 = vpop.f32.mrf.mxu3 }
 0x18d   :  { %v2853_v52 = vadd.f32 %v403_v31, %v295_v61 }
 0x18f   :  { %v414_v55 = vsel %vm329_vm0, %v2853_v52, -inf }
 0x194   :  { %v405_v34 = vpop.f32.mrf.mxu3 }
 0x195   :  { %v2836_v36 = vadd.f32 %v405_v34, %v296_v35 }
 0x197   :  { %v417_v40 = vsel %vm329_vm0, %v2836_v36, -inf }
 0x1d3   :  { %v332_v22 = vpop.xlane.xlu0 %331 }
 0x1d4   :  { %v342_v23 = vsub.f32 %v320_v39, %v332_v22 }
 0x1d6   :  { %v346_v24 = vmul.f32 1.442695, %v342_v23 }
 0x1d8   :  { %2566 = vpow2.f32 %v346_v24 }
 0x1db   :  { %v335_v25 = vpop.xlane.xlu0 %334 }
 0x1dc   :  { %v343_v26 = vsub.f32 %v322_v43, %v335_v25 }
 0x1de   :  { %v2824_v27 = vpop.eup %2566  ;;  %v348_v28 = vmul.f32 1.442695, %v343_v26 }
 0x1df   :  { %v354_v29 = vsel %vm329_vm0, %v2824_v27, 0.0 }
 0x1e0   :  { %2568 = vpow2.f32 %v348_v28  ;;  %355 = vadd.xlane.f32.xlu2 %v354_v29 }
 0x1e6   :  { %v2828_v30 = vpop.eup %2568 }
 0x1e7   :  { %v357_v53 = vsel %vm329_vm0, %v2828_v30, 0.0 }
 0x1e8   :  { %358 = vadd.xlane.f32.xlu2 %v357_v53 }
 0x1f0   :  { %337 = vmax.xlane.f32.xlu2 %v336_v33 }
 0x1f3   :  { %v410_v37 = vpop.xlane.xlu1 %409 }
 0x1f4   :  { %v420_v38 = vsub.f32 %v399_v10, %v410_v37  ;;  %v384_v10 = vmul.f32 %v2808_v15, %v280_v0  ;;  %v2136_v0 = vld [vmem:[#allocation2 + $0x108] sm:$0xf] }
 0x1f5   :  { %v2137_v4 = vor.u32 %v2481_v3, %v2136_v0 }
 0x1f6   :  { %v424_v39 = vmul.f32 1.442695, %v420_v38  ;;  %v387_v14 = vpack.c.bf16 %v384_v10, %v383_v8  ;;  %v2133_v8 = vor.u32 %v2480_v6, %v2132_v5  ;;  %v2479_v10 = vld [vmem:[#allocation2 + $0xe0] sm:$0xf0] }
 0x1f7   :  { %v2129_v11 = vor.u32 %v2479_v10, %v2128_v9  ;;  %v2212_v9 = vld [vmem:[#allocation2 + $0x228] sm:$0xf]  ;;  %v2501_v10 = vld [vmem:[#allocation2 + $0x230] sm:$0xf0] }
 0x1f8   :  { %2570 = vpow2.f32 %v424_v39  ;;  %418 = vmax.xlane.f32.xlu2 %v417_v40  ;;  %467 = vmatpush.bf16.msrb.mxu0 %v387_v14  ;;  %v2213_v1 = vor.u32 %v2501_v10, %v2212_v9 }
 0x1fa   :  { %796 = vmatpush.bf16.msra.mxu3 %v2213_v1 }
 0x1fb   :  { %v413_v41 = vpop.xlane.xlu1 %412 }
 0x1fc   :  { %v421_v42 = vsub.f32 %v401_v20, %v413_v41 }
 0x1fe   :  { %v2840_v43 = vpop.eup %2570  ;;  %v426_v44 = vmul.f32 1.442695, %v421_v42 }
 0x1ff   :  { %v432_v45 = vsel %vm329_vm0, %v2840_v43, 0.0 }
 0x200   :  { %2572 = vpow2.f32 %v426_v44  ;;  %433 = vadd.xlane.f32.xlu0 %v432_v45 }
 0x206   :  { %v2847_v49 = vpop.eup %2572 }
 0x207   :  { %v435_v50 = vsel %vm329_vm0, %v2847_v49, 0.0 }
 0x208   :  { %436 = vadd.xlane.f32.xlu1 %v435_v50  ;;  %340 = vmax.xlane.f32.xlu0 %v339_v51  ;;  %v2152_v51 = vld [vmem:[#allocation2 + $0x168] sm:$0xf] }
 0x210   :  { %415 = vmax.xlane.f32.xlu1 %v414_v55  ;;  %v2484_v55 = vld [vmem:[#allocation2 + $0x158] sm:$0xf0] }
 0x253   :  { %v356_v17 = vpop.xlane.xlu2 %355 }
 0x254   :  { %2574 = vrcp.f32 %v356_v17 }
 0x25a   :  { %v2575_v19 = vpop.eup %2574 }
 0x25b   :  { %v359_v18 = vpop.xlane.xlu2 %358  ;;  %v370_v21 = vmul.f32 %v2575_v19, %v2824_v27 }
 0x25c   :  { %2576 = vrcp.f32 %v359_v18 }
 0x262   :  { %v2577_v20 = vpop.eup %2576 }
 0x263   :  { %v371_v7 = vmul.f32 %v2577_v20, %v2828_v30  ;;  %v338_v22 = vpop.xlane.xlu2 %337 }
 0x264   :  { %v344_v15 = vsub.f32 %v2832_v32, %v338_v22 }
 0x265   :  { %v374_v23 = vpack.c.bf16 %v371_v7, %v370_v21 }
 0x266   :  { %v350_v24 = vmul.f32 1.442695, %v344_v15 }
 0x267   :  { %2120 = vmatmul.msk.bf16.vlgmr.msrb.gmra.mxu1 %vm329_vm0, %v374_v23 }
 0x268   :  { %2578 = vpow2.f32 %v350_v24 }
 0x26b   :  { %v419_v25 = vpop.xlane.xlu2 %418 }
 0x26c   :  { %v423_v26 = vsub.f32 %v2836_v36, %v419_v25 }
 0x26e   :  { %v2871_v28 = vpop.eup %2578  ;;  %v430_v29 = vmul.f32 1.442695, %v423_v26 }
 0x26f   :  { %v360_v31 = vsel %vm329_vm0, %v2871_v28, 0.0 }
 0x270   :  { %2580 = vpow2.f32 %v430_v29  ;;  %361 = vadd.xlane.f32.xlu0 %v360_v31 }
 0x273   :  { %v434_v27 = vpop.xlane.xlu0 %433 }
 0x274   :  { %2582 = vrcp.f32 %v434_v27 }
 0x276   :  { %v2875_v30 = vpop.eup %2580 }
 0x277   :  { %v441_v53 = vsel %vm329_vm0, %v2875_v30, 0.0 }
 0x278   :  { %442 = vadd.xlane.f32.xlu0 %v441_v53 }
 0x27a   :  { %v2583_v35 = vpop.eup %2582 }
 0x27b   :  { %v437_v61 = vpop.xlane.xlu1 %436  ;;  %v341_v32 = vpop.xlane.xlu0 %340  ;;  %v448_v37 = vmul.f32 %v2583_v35, %v2840_v43  ;;  %v2485_v43 = vld [vmem:[#allocation2 + $0x170] sm:$0xf0]  ;;  %v522_v35 = vld [vmem:[#allocation4 + $0xc3] ss:$0 sm:$0xff] }
 0x27c   :  { %2584 = vrcp.f32 %v437_v61  ;;  %v345_v33 = vsub.f32 %v2845_v46, %v341_v32 }
 0x27e   :  { %v352_v34 = vmul.f32 1.442695, %v345_v33 }
 0x280   :  { %2586 = vpow2.f32 %v352_v34 }
 0x282   :  { %v2585_v36 = vpop.eup %2584 }
 0x283   :  { %v449_v38 = vmul.f32 %v2585_v36, %v2847_v49  ;;  %v416_v39 = vpop.xlane.xlu1 %415  ;;  %v2153_v49 = vor.u32 %v2485_v43, %v2152_v51 }
 0x284   :  { %v422_v40 = vsub.f32 %v2853_v52, %v416_v39  ;;  %v2149_v52 = vor.u32 %v2484_v55, %v2148_v54 }
 0x285   :  { %v452_v41 = vpack.c.bf16 %v449_v38, %v448_v37  ;;  %571 = vmatpush.bf16.msrb.mxu2 %v2153_v49 }
 0x286   :  { %v2587_v42 = vpop.eup %2586  ;;  %v428_v44 = vmul.f32 1.442695, %v422_v40 }
 0x287   :  { %2118 = vmatmul.msk.bf16.vlgmr.msrb.gmra.mxu0 %vm329_vm0, %v452_v41  ;;  %v363_v45 = vsel %vm329_vm0, %v2587_v42, 0.0 }
 0x288   :  { %2588 = vpow2.f32 %v428_v44  ;;  %364 = vadd.xlane.f32.xlu1 %v363_v45 }
 0x289   :  { %572 = vmatpush.bf16.msrb.mxu2 %v2149_v52 }
 0x28d   :  { %573 = vmatpush.bf16.msrb.mxu2 %v2145_v58 }
 0x28e   :  { %v2589_v46 = vpop.eup %2588 }
 0x28f   :  { %v438_v50 = vsel %vm329_vm0, %v2589_v46, 0.0 }
 0x290   :  { %439 = vadd.xlane.f32.xlu2 %v438_v50  ;;  %v2738_v50 = vmov 128.0  }
 0x291   :  { %574 = vmatpush.bf16.msrb.mxu2 %v2141_v2 }
 0x295   :  { %575 = vmatpush.bf16.msrb.mxu2 %v2137_v4 }
 0x299   :  { %576 = vmatpush.bf16.msrb.mxu2 %v2133_v8 }
 0x29d   :  { %577 = vmatpush.bf16.msrb.mxu2 %v2129_v11  ;;  %v2500_v11 = vld [vmem:[#allocation2 + $0x22c] sm:$0xf] }
 0x2a1   :  { %578 = vmatpush.bf16.msrb.mxu2 %v2125_v13  ;;  %v2217_v13 = vor.u32 %v2500_v11, %v2214_v12 }
 0x2a3   :  { %815 = vmatpush.bf16.msra.mxu0 %v2217_v13 }
 0x2e3   :  { %v362_v14 = vpop.xlane.xlu0 %361 }
 0x2e4   :  { %2590 = vrcp.f32 %v362_v14  ;;  %v494_v20 = vpop.f32.mrf.mxu1  ;;  %v2204_v14 = vld [vmem:[#allocation2 + $0x210] sm:$0xf] }
 0x2ea   :  { %v2591_v18 = vpop.eup %2590 }
 0x2eb   :  { %v443_v17 = vpop.xlane.xlu0 %442  ;;  %v372_v7 = vmul.f32 %v2591_v18, %v2871_v28  ;;  %v2206_v18 = vld [vmem:[#allocation2 + $0x21c] sm:$0xf0] }
 0x2ec   :  { %v496_v31 = vpop.f32.mrf.mxu1 }
 0x2fb   :  { %v365_v16 = vpop.xlane.xlu1 %364 }
 0x2fc   :  { %2592 = vrcp.f32 %v365_v16  ;;  %v2498_v16 = vld [vmem:[#allocation2 + $0x214] sm:$0xf] }
 0x2fd   :  { %2594 = vrcp.f32 %v443_v17 }
 0x302   :  { %v2593_v19 = vpop.eup %2592 }
 0x303   :  { %v440_v21 = vpop.xlane.xlu2 %439  ;;  %v373_v22 = vmul.f32 %v2593_v19, %v2587_v42  ;;  %v2595_v24 = vpop.eup %2594  ;;  %v2209_v19 = vor.u32 %v2498_v16, %v2206_v18 }
 0x304   :  { %2596 = vrcp.f32 %v440_v21  ;;  %v469_v15 = vpop.f32.mrf.mxu0  ;;  %v451_v29 = vmul.f32 %v2595_v24, %v2875_v30  ;;  %v2496_v21 = vld [vmem:[#allocation2 + $0x1fc] sm:$0xf]  ;;  %v2495_v24 = vld [vmem:[#allocation2 + $0x1e8] sm:$0xf0] }
 0x305   :  { %v375_v23 = vpack.c.bf16 %v373_v22, %v372_v7  ;;  %v495_v53 = vadd.f32 %v494_v20, %v469_v15  ;;  %2598 = vrcp.f32 %v2738_v50  ;;  %816 = vmatpush.bf16.msra.mxu0 %v2209_v19  ;;  %v2497_v20 = vld [vmem:[#allocation2 + $0x200] sm:$0xf0]  ;;  %v2198_v22 = vld [vmem:[#allocation2 + $0x204] sm:$0xf0] }
 0x306   :  { %v2201_v15 = vor.u32 %v2496_v21, %v2198_v22  ;;  %v2927_v22 = vld [vmem:[#allocation4 + $0xc4] ss:$0 sm:$0xff] }
 0x307   :  { %2121 = vmatmul.msk.bf16.gmra.mxu1 %vm329_vm0, %v375_v23  ;;  %v2188_v23 = vld [vmem:[#allocation2 + $0x1e0] sm:$0xf] }
 0x309   :  { %817 = vmatpush.bf16.msra.mxu0 %v2201_v15 }
 0x30a   :  { %v2597_v25 = vpop.eup %2596 }
 0x30b   :  { %v450_v26 = vmul.f32 %v2597_v25, %v2589_v46  ;;  %v2599_v51 = vpop.eup %2598  ;;  %v2494_v25 = vld [vmem:[#allocation2 + $0x1e4] sm:$0xf] }
 0x30c   :  { %v471_v27 = vpop.f32.mrf.mxu0  ;;  %v605_v43 = vmul.f32 128.0, %v2599_v51  ;;  %vm609_vm1 = vweird.f32 %v2599_v51 }
 0x30d   :  { %v497_v61 = vadd.f32 %v496_v31, %v471_v27  ;;  %v453_v32 = vpack.c.bf16 %v451_v29, %v450_v26  ;;  %v2189_v26 = vor.u32 %v2495_v24, %v2188_v23  ;;  %v2190_v29 = vld [vmem:[#allocation2 + $0x1ec] sm:$0xf0]  ;;  %v2180_v27 = vld [vmem:[#allocation2 + $0x1c8] sm:$0xf] }
 0x30e   :  { %v606_v54 = vsub.f32 1.0, %v605_v43  ;;  %v2193_v31 = vor.u32 %v2494_v25, %v2190_v29  ;;  %v2486_v43 = vld [vmem:[#allocation2 + $0x184] sm:$0xf] }
 0x30f   :  { %v504_v33 = vpack.c.bf16 %v497_v61, %v495_v53  ;;  %2119 = vmatmul.msk.bf16.gmra.mxu0 %vm329_vm0, %v453_v32  ;;  %v2493_v53 = vld [vmem:[#allocation2 + $0x1d0] sm:$0xf0]  ;;  %v2492_v61 = vld [vmem:[#allocation2 + $0x1cc] sm:$0xf] }
 0x310   :  { %v607_v49 = vmul.f32 %v2599_v51, %v606_v54  ;;  %818 = vmatpush.bf16.msra.mxu0 %v2193_v31  ;;  %v2181_v32 = vor.u32 %v2493_v53, %v2180_v27  ;;  %v2158_v54 = vld [vmem:[#allocation2 + $0x18c] sm:$0xf0]  ;;  %v2280_v31 = vld [vmem:[#allocation2 + $0x3a8] sm:$0xf]  ;;  %v2517_v27 = vld [vmem:[#allocation2 + $0x3b0] sm:$0xf0] }
 0x311   :  { %579 = vmatmul.bf16.vlgmr.msrb.gmra.mxu2 %v504_v33  ;;  %v2182_v33 = vld [vmem:[#allocation2 + $0x1d4] sm:$0xf0]  ;;  %v2276_v53 = vld [vmem:[#allocation2 + $0x390] sm:$0xf] }
 0x312   :  { %v608_v55 = vadd.f32 %v2599_v51, %v607_v49 }
 0x314   :  { %v2892_v52 = vsel %vm609_vm1, %v2599_v51, %v608_v55 }
 0x384   :  { %v499_v28 = vpop.f32.mrf.mxu1 }
 0x38c   :  { %v474_v34 = vpop.f32.mrf.mxu0  ;;  %v501_v36 = vpop.f32.mrf.mxu1 }
 0x38d   :  { %v500_v39 = vadd.f32 %v499_v28, %v474_v34  ;;  %v2185_v28 = vor.u32 %v2492_v61, %v2182_v33  ;;  %v2172_v34 = vld [vmem:[#allocation2 + $0x1b0] sm:$0xf]  ;;  %v2516_v61 = vld [vmem:[#allocation2 + $0x398] sm:$0xf0]  ;;  %v2248_v33 = vld [vmem:[#allocation2 + $0x2e8] sm:$0xf] }
 0x38f   :  { %819 = vmatpush.bf16.msra.mxu0 %v2185_v28  ;;  %v2509_v28 = vld [vmem:[#allocation2 + $0x2f0] sm:$0xf0] }
 0x394   :  { %v476_v37 = vpop.f32.mrf.mxu0  ;;  %v580_v38 = vpop.f32.mrf.mxu2 }
 0x395   :  { %v502_v40 = vadd.f32 %v501_v36, %v476_v37  ;;  %v581_v41 = vadd.f32 %v580_v38, %v522_v35  ;;  %v2490_v36 = vld [vmem:[#allocation2 + $0x1b4] sm:$0xf]  ;;  %v2174_v38 = vld [vmem:[#allocation2 + $0x1bc] sm:$0xf0] }
 0x397   :  { %v590_v30 = vadd.f32 %v581_v41, %v2774_v47  ;;  %v505_v42 = vpack.c.bf16 %v502_v40, %v500_v39  ;;  %v2177_v39 = vor.u32 %v2490_v36, %v2174_v38  ;;  %v2164_v40 = vld [vmem:[#allocation2 + $0x198] sm:$0xf]  ;;  %v2489_v41 = vld [vmem:[#allocation2 + $0x1a0] sm:$0xf0]  ;;  %v2244_v38 = vld [vmem:[#allocation2 + $0x2d0] sm:$0xf] }
 0x398   :  { %v2515_v36 = vld [vmem:[#allocation2 + $0x380] sm:$0xf0] }
 0x399   :  { %596 = vadd.xlane.f32.xlu1 %v590_v30  ;;  %584 = vmatmul.bf16.gmra.mxu2 %v505_v42  ;;  %v2165_v42 = vor.u32 %v2489_v41, %v2164_v40  ;;  %v2268_v41 = vld [vmem:[#allocation2 + $0x360] sm:$0xf] }
 0x39a   :  { %820 = vmatpush.bf16.msra.mxu0 %v2177_v39  ;;  %v2508_v39 = vld [vmem:[#allocation2 + $0x2d8] sm:$0xf0] }
 0x39b   :  { %v2245_v40 = vor.u32 %v2508_v39, %v2244_v38 }
 0x39c   :  { %v582_v44 = vpop.f32.mrf.mxu2 }
 0x39d   :  { %v583_v45 = vadd.f32 %v582_v44, %v522_v35  ;;  %v2166_v44 = vld [vmem:[#allocation2 + $0x1a4] sm:$0xf0] }
 0x39f   :  { %v591_v46 = vadd.f32 %v583_v45, %v2776_v48  ;;  %v2156_v45 = vld [vmem:[#allocation2 + $0x180] sm:$0xf] }
 0x3a1   :  { %598 = vadd.xlane.f32.xlu2 %v591_v46 }
 0x40c   :  { %v597_v56 = vpop.xlane.xlu1 %596 }
 0x40d   :  { %v611_v47 = vmul.f32 %v2892_v52, %v597_v56  ;;  %v2161_v56 = vor.u32 %v2486_v43, %v2158_v54  ;;  %v2236_v54 = vld [vmem:[#allocation2 + $0x2a0] sm:$0xf] }
 0x40f   :  { %v2895_v57 = vsub.f32 %v590_v30, %v611_v47  ;;  %v2488_v30 = vld [vmem:[#allocation2 + $0x19c] sm:$0xf] }
 0x410   :  { %v2169_v51 = vor.u32 %v2488_v30, %v2166_v44  ;;  %v2514_v30 = vld [vmem:[#allocation2 + $0x368] sm:$0xf0]  ;;  %v2240_v44 = vld [vmem:[#allocation2 + $0x2b8] sm:$0xf] }
 0x411   :  { %v619_v58 = vmul.f32 %v2895_v57, %v2895_v57 }
 0x412   :  { %821 = vmatpush.bf16.msra.mxu0 %v2169_v51  ;;  %v2513_v51 = vld [vmem:[#allocation2 + $0x350] sm:$0xf0] }
 0x413   :  { %623 = vadd.xlane.f32.xlu0 %v619_v58 }
 0x414   :  { %v599_v48 = vpop.xlane.xlu2 %598 }
 0x415   :  { %v612_v62 = vmul.f32 %v2892_v52, %v599_v48 }
 0x416   :  { %822 = vmatpush.bf16.msra.mxu0 %v2161_v56  ;;  %v2260_v56 = vld [vmem:[#allocation2 + $0x330] sm:$0xf] }
 0x417   :  { %v2900_v63 = vsub.f32 %v591_v46, %v612_v62  ;;  %v2487_v46 = vld [vmem:[#allocation2 + $0x188] sm:$0xf0] }
 0x418   :  { %v2157_v55 = vor.u32 %v2487_v46, %v2156_v45  ;;  %v2507_v45 = vld [vmem:[#allocation2 + $0x2c0] sm:$0xf0] }
 0x419   :  { %v620_v0 = vmul.f32 %v2900_v63, %v2900_v63  ;;  %v2241_v46 = vor.u32 %v2507_v45, %v2240_v44 }
 0x41b   :  { %625 = vadd.xlane.f32.xlu1 %v620_v0 }
 0x41c   :  { %v585_v2 = vpop.f32.mrf.mxu2 }
 0x41d   :  { %v586_v3 = vadd.f32 %v585_v2, %v522_v35 }
 0x41f   :  { %v2905_v4 = vadd.f32 %v586_v3, %v2790_v59  ;;  %v2499_v59 = vld [vmem:[#allocation2 + $0x218] sm:$0xf0] }
 0x420   :  { %v2205_v17 = vor.u32 %v2499_v59, %v2204_v14 }
 0x421   :  { %600 = vadd.xlane.f32.xlu2 %v2905_v4 }
 0x422   :  { %797 = vmatpush.bf16.msra.mxu3 %v2205_v17 }
 0x424   :  { %v587_v5 = vpop.f32.mrf.mxu2 }
 0x425   :  { %v588_v6 = vadd.f32 %v587_v5, %v522_v35  ;;  %v2491_v35 = vld [vmem:[#allocation2 + $0x1b8] sm:$0xf0] }
 0x426   :  { %v2173_v37 = vor.u32 %v2491_v35, %v2172_v34  ;;  %v2249_v34 = vor.u32 %v2509_v28, %v2248_v33  ;;  %v2272_v35 = vld [vmem:[#allocation2 + $0x378] sm:$0xf] }
 0x427   :  { %v2909_v8 = vadd.f32 %v588_v6, %v2792_v60  ;;  %v2196_v60 = vld [vmem:[#allocation2 + $0x1f8] sm:$0xf] }
 0x428   :  { %v2197_v7 = vor.u32 %v2497_v20, %v2196_v60  ;;  %974 = vmatpush.bf16.msra.mxu1 %v2249_v34 }
 0x429   :  { %602 = vadd.xlane.f32.xlu0 %v2909_v8 }
 0x42a   :  { %798 = vmatpush.bf16.msra.mxu3 %v2197_v7 }
 0x42c   :  { %975 = vmatpush.bf16.msra.mxu1 %v2245_v40 }
 0x42e   :  { %799 = vmatpush.bf16.msra.mxu3 %v2189_v26 }
 0x430   :  { %976 = vmatpush.bf16.msra.mxu1 %v2241_v46 }
 0x432   :  { %800 = vmatpush.bf16.msra.mxu3 %v2181_v32  ;;  %v2277_v32 = vor.u32 %v2516_v61, %v2276_v53 }
 0x436   :  { %801 = vmatpush.bf16.msra.mxu3 %v2173_v37  ;;  %v2273_v37 = vor.u32 %v2515_v36, %v2272_v35 }
 0x43a   :  { %802 = vmatpush.bf16.msra.mxu3 %v2165_v42  ;;  %v2269_v42 = vor.u32 %v2514_v30, %v2268_v41 }
 0x43e   :  { %803 = vmatpush.bf16.msra.mxu3 %v2157_v55 }
 0x486   :  { %v624_v50 = vpop.xlane.xlu0 %623 }
 0x487   :  { %v631_v49 = vmul.f32 %v624_v50, %v2892_v52  ;;  %v2264_v50 = vld [vmem:[#allocation2 + $0x348] sm:$0xf] }
 0x488   :  { %v2265_v43 = vor.u32 %v2513_v51, %v2264_v50 }
 0x489   :  { %v635_v47 = vadd.f32 1e-05, %v631_v49  ;;  %v2506_v49 = vld [vmem:[#allocation2 + $0x2a8] sm:$0xf0] }
 0x48a   :  { %v2237_v55 = vor.u32 %v2506_v49, %v2236_v54 }
 0x48b   :  { %2600 = vrsqrt.f32 %v635_v47  ;;  %vm645_vm3 = vweird.f32 %v635_v47 }
 0x48c   :  { %977 = vmatpush.bf16.msra.mxu1 %v2237_v55 }
 0x48e   :  { %v626_v58 = vpop.xlane.xlu1 %625 }
 0x48f   :  { %v632_v48 = vmul.f32 %v626_v58, %v2892_v52 }
 0x491   :  { %v2601_v62 = vpop.eup %2600  ;;  %v636_v0 = vadd.f32 1e-05, %v632_v48  ;;  %v2232_v48 = vld [vmem:[#allocation2 + $0x288] sm:$0xf] }
 0x492   :  { %v640_v2 = vmul.f32 %v2601_v62, %v635_v47  ;;  %vm646_vm2 = vweird.f32 %v2601_v62  ;;  %v2512_v47 = vld [vmem:[#allocation2 + $0x338] sm:$0xf0] }
 0x493   :  { %2602 = vrsqrt.f32 %v636_v0  ;;  %vm647_vm4 = vmor %vm645_vm3, %vm646_vm2  ;;  %vm655_vm6 = vweird.f32 %v636_v0  ;;  %v2261_v58 = vor.u32 %v2512_v47, %v2260_v56 }
 0x494   :  { %v641_v3 = vmul.f32 %v2601_v62, %v640_v2  ;;  %v601_v5 = vpop.xlane.xlu2 %600 }
 0x495   :  { %v613_v6 = vmul.f32 %v2892_v52, %v601_v5  ;;  %v2256_v5 = vld [vmem:[#allocation2 + $0x318] sm:$0xf] }
 0x496   :  { %v642_v9 = vmul.f32 0.5, %v641_v3 }
 0x497   :  { %v2916_v10 = vsub.f32 %v2905_v4, %v613_v6  ;;  %v2511_v6 = vld [vmem:[#allocation2 + $0x320] sm:$0xf0] }
 0x498   :  { %v643_v11 = vsub.f32 1.5, %v642_v9 }
 0x499   :  { %v2603_v1 = vpop.eup %2602  ;;  %v621_v12 = vmul.f32 %v2916_v10, %v2916_v10 }
 0x49a   :  { %v644_v13 = vmul.f32 %v2601_v62, %v643_v11  ;;  %v650_v14 = vmul.f32 %v2603_v1, %v636_v0  ;;  %vm656_vm5 = vweird.f32 %v2603_v1  ;;  %v2257_v11 = vor.u32 %v2511_v6, %v2256_v5 }
 0x49b   :  { %627 = vadd.xlane.f32.xlu1 %v621_v12  ;;  %vm657_vm7 = vmor %vm655_vm6, %vm656_vm5  ;;  %v2504_v12 = vld [vmem:[#allocation2 + $0x278] sm:$0xf0] }
 0x49c   :  { %v651_v59 = vmul.f32 %v2603_v1, %v650_v14  ;;  %v603_v16 = vpop.xlane.xlu0 %602  ;;  %v648_v18 = vsel %vm647_vm4, %v2601_v62, %v644_v13  ;;  %v2505_v62 = vld [vmem:[#allocation2 + $0x290] sm:$0xf0]  ;;  %v2252_v14 = vld [vmem:[#allocation2 + $0x300] sm:$0xf] }
 0x49d   :  { %v614_v17 = vmul.f32 %v2892_v52, %v603_v16  ;;  %v679_v20 = vmul.f32 %v648_v18, %v2895_v57  ;;  %v2233_v2 = vor.u32 %v2505_v62, %v2232_v48  ;;  %v2224_v18 = vld [vmem:[#allocation2 + $0x258] sm:$0xf] }
 0x49e   :  { %v652_v19 = vmul.f32 0.5, %v651_v59  ;;  %v2510_v59 = vld [vmem:[#allocation2 + $0x308] sm:$0xf0] }
 0x49f   :  { %v2922_v4 = vsub.f32 %v2909_v8, %v614_v17  ;;  %v683_v24 = vmul.f32 %v679_v20, %v2927_v22  ;;  %v2931_v8 = vld [vmem:[#allocation4 + $0xc5] ss:$0 sm:$0xff]  ;;  %978 = vmatpush.bf16.msra.mxu1 %v2233_v2  ;;  %v2253_v16 = vor.u32 %v2510_v59, %v2252_v14 }
 0x4a0   :  { %v653_v60 = vsub.f32 1.5, %v652_v19  ;;  %v2503_v19 = vld [vmem:[#allocation2 + $0x260] sm:$0xf0] }
 0x4a1   :  { %v622_v21 = vmul.f32 %v2922_v4, %v2922_v4  ;;  %v2935_v57 = vadd.f32 %v683_v24, %v2931_v8  ;;  %v2225_v20 = vor.u32 %v2503_v19, %v2224_v18  ;;  %v2502_v24 = vld [vmem:[#allocation2 + $0x248] sm:$0xf0] }
 0x4a2   :  { %v654_v7 = vmul.f32 %v2603_v1, %v653_v60 }
 0x4a3   :  { %629 = vadd.xlane.f32.xlu2 %v622_v21 }
 0x4a4   :  { %v658_v15 = vsel %vm657_vm7, %v2603_v1, %v654_v7  ;;  %v2228_v1 = vld [vmem:[#allocation2 + $0x270] sm:$0xf] }
 0x4a5   :  { %v680_v23 = vmul.f32 %v658_v15, %v2900_v63  ;;  %v2281_v63 = vor.u32 %v2517_v27, %v2280_v31  ;;  %v2229_v13 = vor.u32 %v2504_v12, %v2228_v1 }
 0x4a7   :  { %v684_v25 = vmul.f32 %v680_v23, %v2927_v22  ;;  %993 = vmatpush.bf16.msra.mxu2 %v2281_v63  ;;  %979 = vmatpush.bf16.msra.mxu1 %v2229_v13  ;;  %v2220_v23 = vld [vmem:[#allocation2 + $0x240] sm:$0xf]  ;;  %v2956_v13 = vld [vmem:[#allocation4 + $0xc7] ss:$0 sm:$0xff] }
 0x4a9   :  { %v2938_v26 = vadd.f32 %v684_v25, %v2931_v8  ;;  %v2221_v25 = vor.u32 %v2502_v24, %v2220_v23 }
 0x4ab   :  { %v691_v29 = vpack.c.bf16 %v2938_v26, %v2935_v57  ;;  %994 = vmatpush.bf16.msra.mxu2 %v2277_v32  ;;  %980 = vmatpush.bf16.msra.mxu1 %v2225_v20 }
 0x4ad   :  { %804 = vmatmul.bf16.vlgmr.msra.gmra.mxu3 %v691_v29  ;;  %823 = vmatmul.bf16.vlgmr.msra.gmra.mxu0 %v691_v29 }
 0x4af   :  { %995 = vmatpush.bf16.msra.mxu2 %v2273_v37  ;;  %981 = vmatpush.bf16.msra.mxu1 %v2221_v25  ;;  %v710_v37 = vld [vmem:[#allocation4 + $0xc6] ss:$8 sm:$0x3] }
 0x4b0   :  { %v713_v40 = vperm.slane %v710_v37, 1  ;;  %v712_v51 = vperm.slane %v710_v37, 0  ;;  %v2308_v37 = vld [vmem:[#allocation2 + $0x450] sm:$0xf] }
 0x4b3   :  { %996 = vmatpush.bf16.msra.mxu2 %v2269_v42 }
 0x4b7   :  { %997 = vmatpush.bf16.msra.mxu2 %v2265_v43 }
 0x4bb   :  { %998 = vmatpush.bf16.msra.mxu2 %v2261_v58 }
 0x4bf   :  { %999 = vmatpush.bf16.msra.mxu2 %v2257_v11 }
 0x4c3   :  { %1000 = vmatpush.bf16.msra.mxu2 %v2253_v16 }
 0x50e   :  { %v628_v0 = vpop.xlane.xlu1 %627 }
 0x50f   :  { %v633_v3 = vmul.f32 %v628_v0, %v2892_v52 }
 0x511   :  { %v637_v9 = vadd.f32 1e-05, %v633_v3 }
 0x513   :  { %2604 = vrsqrt.f32 %v637_v9  ;;  %vm665_vm9 = vweird.f32 %v637_v9 }
 0x516   :  { %v630_v17 = vpop.xlane.xlu2 %629 }
 0x517   :  { %v634_v60 = vmul.f32 %v630_v17, %v2892_v52 }
 0x519   :  { %v2605_v21 = vpop.eup %2604  ;;  %v638_v7 = vadd.f32 1e-05, %v634_v60 }
 0x51a   :  { %v660_v15 = vmul.f32 %v2605_v21, %v637_v9  ;;  %vm666_vm8 = vweird.f32 %v2605_v21 }
 0x51b   :  { %2606 = vrsqrt.f32 %v638_v7  ;;  %vm667_vm10 = vmor %vm665_vm9, %vm666_vm8  ;;  %vm675_vm12 = vweird.f32 %v638_v7 }
 0x51c   :  { %v661_v29 = vmul.f32 %v2605_v21, %v660_v15 }
 0x51e   :  { %v662_v31 = vmul.f32 0.5, %v661_v29 }
 0x520   :  { %v663_v27 = vsub.f32 1.5, %v662_v31 }
 0x521   :  { %v2607_v63 = vpop.eup %2606 }
 0x522   :  { %v664_v53 = vmul.f32 %v2605_v21, %v663_v27  ;;  %v670_v61 = vmul.f32 %v2607_v63, %v638_v7  ;;  %vm676_vm11 = vweird.f32 %v2607_v63 }
 0x523   :  { %vm677_vm13 = vmor %vm675_vm12, %vm676_vm11 }
 0x524   :  { %v671_v32 = vmul.f32 %v2607_v63, %v670_v61  ;;  %v668_v28 = vsel %vm667_vm10, %v2605_v21, %v664_v53 }
 0x525   :  { %v681_v35 = vmul.f32 %v668_v28, %v2916_v10 }
 0x526   :  { %v672_v33 = vmul.f32 0.5, %v671_v32 }
 0x527   :  { %v685_v30 = vmul.f32 %v681_v35, %v2927_v22  ;;  %v2525_v35 = vld [vmem:[#allocation2 + $0x470] sm:$0xf0] }
 0x528   :  { %v673_v34 = vsub.f32 1.5, %v672_v33 }
 0x529   :  { %v2949_v46 = vadd.f32 %v685_v30, %v2931_v8 }
 0x52a   :  { %v674_v36 = vmul.f32 %v2607_v63, %v673_v34  ;;  %v824_v38 = vpop.f32.mrf.mxu0  ;;  %v2312_v34 = vld [vmem:[#allocation2 + $0x468] sm:$0xf] }
 0x52b   :  { %v825_v45 = vadd.f32 %v824_v38, %v713_v40  ;;  %v2524_v38 = vld [vmem:[#allocation2 + $0x458] sm:$0xf0] }
 0x52c   :  { %v678_v39 = vsel %vm677_vm13, %v2607_v63, %v674_v36  ;;  %v2313_v36 = vor.u32 %v2525_v35, %v2312_v34  ;;  %v2998_v34 = vld [vmem:[#allocation4 + $0xd8] ss:$0 sm:$0xff]  ;;  %vm1247_vm13 = vcmask 523264  }
 0x52d   :  { %v682_v41 = vmul.f32 %v678_v39, %v2922_v4  ;;  %v835_v49 = vmax.f32 %v825_v45, 0.0  ;;  %v2309_v39 = vor.u32 %v2524_v38, %v2308_v37  ;;  %v3002_v38 = vld [vmem:[#allocation4 + $0xd9] ss:$0 sm:$0xff] }
 0x52e   :  { %1178 = vmatpush.bf16.msrb.mxu3 %v2313_v36 }
 0x52f   :  { %v686_v42 = vmul.f32 %v682_v41, %v2927_v22  ;;  %v2523_v41 = vld [vmem:[#allocation2 + $0x440] sm:$0xf0] }
 0x530   :  { %v805_v44 = vpop.f32.mrf.mxu3 }
 0x531   :  { %v2952_v10 = vadd.f32 %v686_v42, %v2931_v8  ;;  %v806_v55 = vadd.f32 %v805_v44, %v712_v51  ;;  %v2300_v42 = vld [vmem:[#allocation2 + $0x420] sm:$0xf]  ;;  %v2522_v44 = vld [vmem:[#allocation2 + $0x428] sm:$0xf0] }
 0x532   :  { %v826_v50 = vpop.f32.mrf.mxu0  ;;  %1179 = vmatpush.bf16.msrb.mxu3 %v2309_v39  ;;  %v2301_v45 = vor.u32 %v2522_v44, %v2300_v42 }
 0x533   :  { %v827_v43 = vadd.f32 %v826_v50, %v713_v40  ;;  %v692_v54 = vpack.c.bf16 %v2952_v10, %v2949_v46  ;;  %v834_v58 = vmax.f32 %v806_v55, 0.0  ;;  %v2340_v50 = vld [vmem:[#allocation2 + $0x4c8] sm:$0xf]  ;;  %v2332_v55 = vld [vmem:[#allocation2 + $0x4b0] sm:$0xf] }
 0x535   :  { %v837_v4 = vmax.f32 %v827_v43, 0.0  ;;  %809 = vmatmul.bf16.gmra.mxu3 %v692_v54  ;;  %828 = vmatmul.bf16.gmra.mxu0 %v692_v54  ;;  %v2296_v43 = vld [vmem:[#allocation2 + $0x408] sm:$0xf] }
 0x537   :  { %v843_v22 = vpack.c.bf16 %v837_v4, %v835_v49  ;;  %v2521_v49 = vld [vmem:[#allocation2 + $0x410] sm:$0xf0] }
 0x538   :  { %v807_v56 = vpop.f32.mrf.mxu3  ;;  %v2297_v4 = vor.u32 %v2521_v49, %v2296_v43 }
 0x539   :  { %v808_v47 = vadd.f32 %v807_v56, %v712_v51  ;;  %1001 = vmatmul.bf16.vlgmr.msra.gmra.mxu2 %v843_v22  ;;  %v2531_v22 = vld [vmem:[#allocation2 + $0x4b8] sm:$0xf0]  ;;  %v2292_v56 = vld [vmem:[#allocation2 + $0x3f0] sm:$0xf] }
 0x53b   :  { %v836_v48 = vmax.f32 %v808_v47, 0.0  ;;  %v2978_v47 = vor.u32 %v2531_v22, %v2332_v55 }
 0x53d   :  { %v842_v62 = vpack.c.bf16 %v836_v48, %v834_v58  ;;  %v2520_v58 = vld [vmem:[#allocation2 + $0x3f8] sm:$0xf0] }
 0x53e   :  { %v2293_v48 = vor.u32 %v2520_v58, %v2292_v56 }
 0x53f   :  { %982 = vmatmul.bf16.vlgmr.msra.gmra.mxu1 %v842_v62  ;;  %v2288_v62 = vld [vmem:[#allocation2 + $0x3d8] sm:$0xf] }
 0x5b2   :  { %v829_v8 = vpop.f32.mrf.mxu0 }
 0x5b3   :  { %v830_v2 = vadd.f32 %v829_v8, %v713_v40  ;;  %v2519_v8 = vld [vmem:[#allocation2 + $0x3e0] sm:$0xf0] }
 0x5b5   :  { %v839_v11 = vmax.f32 %v830_v2, 0.0  ;;  %v2289_v2 = vor.u32 %v2519_v8, %v2288_v62 }
 0x5b8   :  { %v810_v0 = vpop.f32.mrf.mxu3 }
 0x5b9   :  { %v811_v14 = vadd.f32 %v810_v0, %v712_v51  ;;  %v2324_v0 = vld [vmem:[#allocation2 + $0x498] sm:$0xf] }
 0x5ba   :  { %v831_v3 = vpop.f32.mrf.mxu0 }
 0x5bb   :  { %v832_v5 = vadd.f32 %v831_v3, %v713_v40  ;;  %v838_v60 = vmax.f32 %v811_v14, 0.0  ;;  %v2304_v40 = vld [vmem:[#allocation2 + $0x438] sm:$0xf]  ;;  %v2529_v3 = vld [vmem:[#allocation2 + $0x4a0] sm:$0xf0] }
 0x5bc   :  { %v983_v6 = vpop.f32.mrf.mxu1  ;;  %v1002_v9 = vpop.f32.mrf.mxu2  ;;  %v2305_v30 = vor.u32 %v2523_v41, %v2304_v40 }
 0x5bd   :  { %v841_v1 = vmax.f32 %v832_v5, 0.0  ;;  %v1003_v12 = vadd.f32 %v1002_v9, %v983_v6  ;;  %v2284_v5 = vld [vmem:[#allocation2 + $0x3c0] sm:$0xf]  ;;  %v2518_v6 = vld [vmem:[#allocation2 + $0x3c8] sm:$0xf0] }
 0x5be   :  { %1180 = vmatpush.bf16.msrb.mxu3 %v2305_v30 }
 0x5bf   :  { %v1012_v59 = vadd.f32 %v1003_v12, %v2935_v57  ;;  %v845_v16 = vpack.c.bf16 %v841_v1, %v839_v11  ;;  %v2982_v11 = vor.u32 %v2529_v3, %v2324_v0  ;;  %v2316_v1 = vld [vmem:[#allocation2 + $0x480] sm:$0xf]  ;;  %v2527_v12 = vld [vmem:[#allocation2 + $0x488] sm:$0xf0] }
 0x5c0   :  { %v812_v17 = vpop.f32.mrf.mxu3 }
 0x5c1   :  { %v813_v18 = vadd.f32 %v812_v17, %v712_v51  ;;  %1006 = vmatmul.bf16.gmra.mxu2 %v845_v16  ;;  %v1017_v19 = vadd.f32 %v2956_v13, %v1012_v59  ;;  %v2533_v51 = vld [vmem:[#allocation2 + $0x4d0] sm:$0xf0]  ;;  %v2285_v59 = vor.u32 %v2518_v6, %v2284_v5  ;;  %v2986_v16 = vor.u32 %v2527_v12, %v2316_v1 }
 0x5c2   :  { %1181 = vmatpush.bf16.msrb.mxu3 %v2301_v45  ;;  %v2974_v54 = vor.u32 %v2533_v51, %v2340_v50  ;;  %v3009_v45 = vld [vmem:[#allocation4 + $0xda] ss:$0 sm:$0xff] }
 0x5c3   :  { %v840_v20 = vmax.f32 %v813_v18, 0.0  ;;  %1023 = vadd.xlane.f32.xlu0 %v1017_v19 }
 0x5c4   :  { %v985_v21 = vpop.f32.mrf.mxu1  ;;  %v1004_v7 = vpop.f32.mrf.mxu2  ;;  %1255 = vmatpush.bf16.msrb.mxu1 %v2974_v54  ;;  %1406 = vmatpush.bf16.msrb.mxu0 %v2974_v54 }
 0x5c5   :  { %v1005_v15 = vadd.f32 %v1004_v7, %v985_v21  ;;  %v844_v23 = vpack.c.bf16 %v840_v20, %v838_v60  ;;  %v2739_v60 = vmov 0.0|0.0  }
 0x5c6   :  { %1182 = vmatpush.bf16.msrb.mxu3 %v2297_v4 }
 0x5c7   :  { %v1013_v24 = vadd.f32 %v1005_v15, %v2938_v26  ;;  %987 = vmatmul.bf16.gmra.mxu1 %v844_v23 }
 0x5c8   :  { %1256 = vmatpush.bf16.msrb.mxu1 %v2978_v47  ;;  %1407 = vmatpush.bf16.msrb.mxu0 %v2978_v47 }
 0x5c9   :  { %v1018_v25 = vadd.f32 %v2956_v13, %v1013_v24 }
 0x5ca   :  { %1183 = vmatpush.bf16.msrb.mxu3 %v2293_v48 }
 0x5cb   :  { %1025 = vadd.xlane.f32.xlu1 %v1018_v25 }
 0x5cc   :  { %1257 = vmatpush.bf16.msrb.mxu1 %v2982_v11  ;;  %1408 = vmatpush.bf16.msrb.mxu0 %v2982_v11 }
 0x5ce   :  { %1184 = vmatpush.bf16.msrb.mxu3 %v2289_v2 }
 0x5d0   :  { %1258 = vmatpush.bf16.msrb.mxu1 %v2986_v16  ;;  %1409 = vmatpush.bf16.msrb.mxu0 %v2986_v16 }
 0x5d2   :  { %1185 = vmatpush.bf16.msrb.mxu3 %v2285_v59 }
 0x5d6   :  { %1541 = vmatpush.bf16.msra.mxu3 %v2974_v54 }
 0x5d7   :  { %1259 = vmatmul.bf16.vlgmr.msrb.gmra.mxu1 %v2739_v60 }
 0x5da   :  { %1542 = vmatpush.bf16.msra.mxu3 %v2978_v47 }
 0x5de   :  { %1543 = vmatpush.bf16.msra.mxu3 %v2982_v11 }
 0x5e2   :  { %1544 = vmatpush.bf16.msra.mxu3 %v2986_v16 }
 0x636   :  { %v1024_v57 = vpop.xlane.xlu0 %1023 }
 0x637   :  { %v1031_v29 = vmul.f32 %v1024_v57, %v2892_v52 }
 0x639   :  { %v2963_v31 = vsub.f32 %v1017_v19, %v1031_v29 }
 0x63b   :  { %v1039_v27 = vmul.f32 %v2963_v31, %v2963_v31 }
 0x63d   :  { %1043 = vadd.xlane.f32.xlu2 %v1039_v27 }
 0x63e   :  { %v1026_v63 = vpop.xlane.xlu1 %1025 }
 0x63f   :  { %v1032_v53 = vmul.f32 %v1026_v63, %v2892_v52 }
 0x641   :  { %v2968_v61 = vsub.f32 %v1018_v25, %v1032_v53 }
 0x643   :  { %v1040_v26 = vmul.f32 %v2968_v61, %v2968_v61 }
 0x644   :  { %v988_v32 = vpop.f32.mrf.mxu1  ;;  %v1007_v33 = vpop.f32.mrf.mxu2 }
 0x645   :  { %v2972_v28 = vadd.f32 %v1007_v33, %v988_v32  ;;  %1045 = vadd.xlane.f32.xlu0 %v1040_v26 }
 0x6b0   :  { %v1044_v9 = vpop.xlane.xlu2 %1043 }
 0x6b1   :  { %v1051_v14 = vmul.f32 %v1044_v9, %v2892_v52 }
 0x6b3   :  { %v1055_v17 = vadd.f32 1e-05, %v1051_v14 }
 0x6b5   :  { %2608 = vrsqrt.f32 %v1055_v17  ;;  %vm1065_vm15 = vweird.f32 %v1055_v17 }
 0x6b8   :  { %v1046_v18 = vpop.xlane.xlu0 %1045 }
 0x6b9   :  { %v1052_v19 = vmul.f32 %v1046_v18, %v2892_v52  ;;  %v2535_v18 = vld [vmem:[#allocation2 + $0x500] sm:$0xf0] }
 0x6bb   :  { %v2609_v20 = vpop.eup %2608  ;;  %v1056_v21 = vadd.f32 1e-05, %v1052_v19  ;;  %v2349_v19 = vld [vmem:[#allocation2 + $0x4e0] sm:$0xf] }
 0x6bc   :  { %v1060_v7 = vmul.f32 %v2609_v20, %v1055_v17  ;;  %vm1066_vm14 = vweird.f32 %v2609_v20  ;;  %v2353_v17 = vld [vmem:[#allocation2 + $0x4f8] sm:$0xf] }
 0x6bd   :  { %2610 = vrsqrt.f32 %v1056_v21  ;;  %vm1067_vm1 = vmor %vm1065_vm15, %vm1066_vm14  ;;  %vm1075_vm3 = vweird.f32 %v1056_v21 }
 0x6be   :  { %v1061_v15 = vmul.f32 %v2609_v20, %v1060_v7  ;;  %v2532_v7 = vld [vmem:[#allocation2 + $0x4cc] sm:$0xf] }
 0x6c0   :  { %v1062_v23 = vmul.f32 0.5, %v1061_v15  ;;  %v2342_v15 = vld [vmem:[#allocation2 + $0x4d4] sm:$0xf0] }
 0x6c2   :  { %v1063_v24 = vsub.f32 1.5, %v1062_v23  ;;  %v2345_v23 = vor.u32 %v2532_v7, %v2342_v15 }
 0x6c3   :  { %v2611_v25 = vpop.eup %2610 }
 0x6c4   :  { %v1064_v57 = vmul.f32 %v2609_v20, %v1063_v24  ;;  %v1070_v29 = vmul.f32 %v2611_v25, %v1056_v21  ;;  %vm1076_vm2 = vweird.f32 %v2611_v25  ;;  %v2534_v21 = vld [vmem:[#allocation2 + $0x4e8] sm:$0xf0]  ;;  %v2530_v24 = vld [vmem:[#allocation2 + $0x4b4] sm:$0xf]  ;;  %1268 = vmatpush.bf16.msra.mxu1 %v2345_v23  ;;  %1554 = vmatpush.bf16.msra.mxu0 %v2345_v23 }
 0x6c5   :  { %vm1077_vm4 = vmor %vm1075_vm3, %vm1076_vm2 }
 0x6c6   :  { %v1071_v27 = vmul.f32 %v2611_v25, %v1070_v29  ;;  %v1068_v63 = vsel %vm1067_vm1, %v2609_v20, %v1064_v57  ;;  %v3018_v20 = vor.u32 %v2535_v18, %v2353_v17  ;;  %v3021_v57 = vor.u32 %v2534_v21, %v2349_v19 }
 0x6c7   :  { %v1099_v32 = vmul.f32 %v1068_v63, %v2963_v31  ;;  %v3007_v31 = vpop.f32.mrf.mxu1  ;;  %v2326_v63 = vld [vmem:[#allocation2 + $0x4a4] sm:$0xf0] }
 0x6c8   :  { %v1072_v53 = vmul.f32 0.5, %v1071_v27  ;;  %1344 = vmatpush.bf16.msrb.mxu2 %v3018_v20  ;;  %v2528_v27 = vld [vmem:[#allocation2 + $0x49c] sm:$0xf] }
 0x6c9   :  { %v1103_v37 = vmul.f32 %v1099_v32, %v2998_v34  ;;  %v2318_v32 = vld [vmem:[#allocation2 + $0x48c] sm:$0xf0] }
 0x6ca   :  { %v1073_v26 = vsub.f32 1.5, %v1072_v53  ;;  %v2329_v53 = vor.u32 %v2528_v27, %v2326_v63 }
 0x6cb   :  { %v1107_v40 = vadd.f32 %v1103_v37, %v3002_v38 }
 0x6cc   :  { %v1074_v33 = vmul.f32 %v2611_v25, %v1073_v26  ;;  %1345 = vmatpush.bf16.msrb.mxu2 %v3021_v57  ;;  %v2526_v26 = vld [vmem:[#allocation2 + $0x484] sm:$0xf] }
 0x6ce   :  { %v1078_v35 = vsel %vm1077_vm4, %v2611_v25, %v1074_v33  ;;  %v2334_v25 = vld [vmem:[#allocation2 + $0x4bc] sm:$0xf0]  ;;  %v2321_v33 = vor.u32 %v2526_v26, %v2318_v32 }
 0x6cf   :  { %v1100_v36 = vmul.f32 %v1078_v35, %v2968_v61  ;;  %v1260_v42 = vpop.f32.mrf.mxu1  ;;  %v2337_v29 = vor.u32 %v2530_v24, %v2334_v25 }
 0x6d0   :  { %1479 = vmatpush.bf16.msra.mxu2 %v3018_v20 }
 0x6d1   :  { %v1104_v39 = vmul.f32 %v1100_v36, %v2998_v34  ;;  %1269 = vmatpush.bf16.msra.mxu1 %v2337_v29  ;;  %1555 = vmatpush.bf16.msra.mxu0 %v2337_v29 }
 0x6d3   :  { %v1108_v41 = vadd.f32 %v1104_v39, %v3002_v38 }
 0x6d4   :  { %1480 = vmatpush.bf16.msra.mxu2 %v3021_v57 }
 0x6d5   :  { %v1111_v30 = vpack.c.bf16 %v1108_v41, %v1107_v40  ;;  %1270 = vmatpush.bf16.msra.mxu1 %v2329_v53  ;;  %1556 = vmatpush.bf16.msra.mxu0 %v2329_v53  ;;  %v3035_v41 = vpop.f32.mrf.mxu2 }
 0x6d7   :  { %1186 = vmatmul.bf16.vlgmr.msrb.gmra.mxu3 %v1111_v30  ;;  %v1262_v44 = vpop.f32.mrf.mxu1  ;;  %v3037_v30 = vld [vmem:[#allocation4 + $0xdb] ss:$0 sm:$0xff] }
 0x6d8   :  { %1689 = vmatpush.bf16.msrb.mxu3 %v2345_v23 }
 0x6d9   :  { %1271 = vmatpush.bf16.msra.mxu1 %v2321_v33  ;;  %1557 = vmatpush.bf16.msra.mxu0 %v2321_v33 }
 0x6dc   :  { %1690 = vmatpush.bf16.msrb.mxu3 %v2337_v29  ;;  %1272 = vmatmul.bf16.vlgmr.msra.gmra.mxu1 %v2739_v60 }
 0x6dd   :  { %1419 = vmatpush.bf16.msrb.mxu1 %v2345_v23 }
 0x6e0   :  { %1691 = vmatpush.bf16.msrb.mxu3 %v2329_v53 }
 0x6e1   :  { %1420 = vmatpush.bf16.msrb.mxu1 %v2337_v29 }
 0x6e4   :  { %1692 = vmatpush.bf16.msrb.mxu3 %v2321_v33 }
 0x6e5   :  { %1421 = vmatpush.bf16.msrb.mxu1 %v2329_v53 }
 0x6e9   :  { %1422 = vmatpush.bf16.msrb.mxu1 %v2321_v33 }
 0x6ed   :  { %1614 = vmatpush.bf16.msra.mxu1 %v3018_v20 }
 0x6f1   :  { %1615 = vmatpush.bf16.msra.mxu1 %v3021_v57 }
 0x759   :  { %v1273_v60 = vpop.f32.mrf.mxu1 }
 0x75a   :  { %v1187_v50 = vpop.f32.mrf.mxu3 }
 0x75b   :  { %v1188_v61 = vadd.f32 %v1187_v50, %v3009_v45 }
 0x75d   :  { %v1277_v51 = vadd.f32 %v1260_v42, %v1188_v61 }
 0x75f   :  { %2612 = vtanh.f32 %v1277_v51  ;;  %v2346_v49 = vmul.f32 -1.442695, %v1277_v51 }
 0x761   :  { %2614 = vpow2.f32 %v2346_v49  ;;  %v1275_v40 = vpop.f32.mrf.mxu1 }
 0x762   :  { %v1189_v19 = vpop.f32.mrf.mxu3 }
 0x763   :  { %v1190_v21 = vadd.f32 %v1189_v19, %v3009_v45 }
 0x765   :  { %v2613_v43 = vpop.eup %2612 }
 0x766   :  { %1300 = vrot.lane.b32.xlu1 %v2613_v43, %s2740_s0 }
 0x767   :  { %v2615_v4 = vpop.eup %2614 }
 0x768   :  { %v1281_v55 = vadd.f32 1.0, %v2615_v4 }
 0x76a   :  { %2616 = vrcp.f32 %v1281_v55  ;;  %v1293_v8 = vand.u32 2147483648, %v1281_v55  ;;  %vm1287_vm6 = vweird.f32 %v1281_v55  ;;  %v1291_v0 = vand.u32 2147483647, %v1281_v55 }
 0x76c   :  { %v1294_v3 = vor.u32 1.1754944e-38, %v1293_v8  ;;  %vm1292_vm8 = vcmp.eq.f32.partialorder %v1291_v0, 8.507059e+37 }
 0x770   :  { %v2617_v22 = vpop.eup %2616 }
 0x771   :  { %v1283_v56 = vmul.f32 %v2617_v22, %v1281_v55  ;;  %vm1288_vm5 = vweird.f32 %v2617_v22 }
 0x772   :  { %vm1289_vm7 = vmor %vm1287_vm6, %vm1288_vm5 }
 0x773   :  { %v1284_v58 = vsub.f32 1.0, %v1283_v56 }
 0x775   :  { %v1285_v48 = vmul.f32 %v2617_v22, %v1284_v58 }
 0x777   :  { %v1286_v62 = vadd.f32 %v2617_v22, %v1285_v48 }
 0x779   :  { %v1290_v2 = vsel %vm1289_vm7, %v2617_v22, %v1286_v62 }
 0x77a   :  { %v1295_v6 = vsel %vm1292_vm8, %v1294_v3, %v1290_v2 }
 0x77b   :  { %v1298_v1 = vmul.f32 0.0, %v1295_v6 }
 0x7d8   :  { %v1301_v5 = vpop.permute.xlu1 %1300 }
 0x7d9   :  { %v1303_v9 = vmul.f32 %v1301_v5, %v1295_v6 }
 0x7db   :  { %1305 = vrot.lane.b32.xlu2 %v1303_v9, %s2741_s5 }
 0x835   :  { %v1306_v12 = vpop.permute.xlu2 %1305 }
 0x836   :  { %v3014_v14 = vadd.f32 %v1306_v12, %v1298_v1 }
 0x838   :  { %2618 = vtanh.f32 %v3014_v14 }
 0x83e   :  { %v2619_v59 = vpop.eup %2618 }
 0x83f   :  { %1311 = vrot.lane.b32.xlu0 %v2619_v59, %s2740_s0 }
 0x8b1   :  { %v1312_v35 = vpop.permute.xlu0 %1311 }
 0x8b2   :  { %v1314_v36 = vmul.f32 %v1312_v35, %v1295_v6 }
 0x8b4   :  { %v1315_v37 = vpack.c.bf16 %v1314_v36, %v1314_v36 }
 0x8b6   :  { %1321 = vrot.lane.b32.xlu2 %v1315_v37, %s2741_s5 }
 0x910   :  { %v1322_v39 = vpop.permute.xlu2 %1321 }
 0x911   :  { %2355 = vmatmul.msk.bf16.vlgmr.msrb.gmra.mxu2 %vm329_vm0, %v1322_v39 }
 0x912   :  { %1676 = vmatpush.bf16.msrb.mxu2 %v2974_v54 }
 0x916   :  { %1677 = vmatpush.bf16.msrb.mxu2 %v2978_v47 }
 0x91a   :  { %1678 = vmatpush.bf16.msrb.mxu2 %v2982_v11 }
 0x91e   :  { %1679 = vmatpush.bf16.msrb.mxu2 %v2986_v16 }
 0x994   :  { %v1347_v42 = vpop.f32.mrf.mxu2 }
 0x995   :  { %v1348_v44 = vadd.f32 %v1347_v42, %v3037_v30 }
 0x997   :  { %v1351_v50 = vadd.f32 %v1348_v44, %v1273_v60 }
 0x999   :  { %2620 = vtanh.f32 %v1351_v50  ;;  %v2356_v54 = vmul.f32 -1.442695, %v1351_v50 }
 0x99b   :  { %2622 = vpow2.f32 %v2356_v54  ;;  %v1014_v54 = vadd.f32 %v2972_v28, %v2949_v46 }
 0x99c   :  { %v1349_v61 = vpop.f32.mrf.mxu2 }
 0x99f   :  { %v2621_v51 = vpop.eup %2620 }
 0x9a0   :  { %1374 = vrot.lane.b32.xlu1 %v2621_v51, %s2740_s0 }
 0x9a1   :  { %v2623_v47 = vpop.eup %2622 }
 0x9a2   :  { %v1355_v11 = vadd.f32 1.0, %v2623_v47  ;;  %v1019_v47 = vadd.f32 %v2956_v13, %v1014_v54 }
 0x9a4   :  { %2624 = vrcp.f32 %v1355_v11  ;;  %v1367_v22 = vand.u32 2147483648, %v1355_v11  ;;  %vm1361_vm10 = vweird.f32 %v1355_v11  ;;  %v1365_v56 = vand.u32 2147483647, %v1355_v11 }
 0x9a6   :  { %v1368_v48 = vor.u32 1.1754944e-38, %v1367_v22  ;;  %vm1366_vm12 = vcmp.eq.f32.partialorder %v1365_v56, 8.507059e+37 }
 0x9a8   :  { %1390 = vrot.lane.b32.xlu1 %v1314_v36, %s2741_s5 }
 0x9aa   :  { %v2625_v16 = vpop.eup %2624 }
 0x9ab   :  { %v1357_v43 = vmul.f32 %v2625_v16, %v1355_v11  ;;  %vm1362_vm9 = vweird.f32 %v2625_v16 }
 0x9ac   :  { %vm1363_vm11 = vmor %vm1361_vm10, %vm1362_vm9 }
 0x9ad   :  { %v1358_v49 = vsub.f32 1.0, %v1357_v43 }
 0x9af   :  { %v1359_v4 = vmul.f32 %v2625_v16, %v1358_v49 }
 0x9b1   :  { %v1360_v55 = vadd.f32 %v2625_v16, %v1359_v4 }
 0x9b3   :  { %v1364_v58 = vsel %vm1363_vm11, %v2625_v16, %v1360_v55 }
 0x9b4   :  { %v1369_v8 = vsel %vm1366_vm12, %v1368_v48, %v1364_v58 }
 0x9b5   :  { %v1372_v2 = vmul.f32 0.0, %v1369_v8 }
 0xa12   :  { %v1375_v62 = vpop.permute.xlu1 %1374 }
 0xa13   :  { %v1377_v0 = vmul.f32 %v1375_v62, %v1369_v8 }
 0xa15   :  { %1379 = vrot.lane.b32.xlu0 %v1377_v0, %s2741_s5 }
 0xa1a   :  { %v1391_v12 = vpop.permute.xlu1 %1390 }
 0xa87   :  { %v1380_v3 = vpop.permute.xlu0 %1379 }
 0xa88   :  { %v3043_v5 = vadd.f32 %v1380_v3, %v1372_v2 }
 0xa8a   :  { %2626 = vtanh.f32 %v3043_v5 }
 0xa90   :  { %v2627_v6 = vpop.eup %2626 }
 0xa91   :  { %1385 = vrot.lane.b32.xlu2 %v2627_v6, %s2740_s0 }
 0xaeb   :  { %v1386_v9 = vpop.permute.xlu2 %1385 }
 0xaec   :  { %v1388_v1 = vmul.f32 %v1386_v9, %v1369_v8 }
 0xaee   :  { %1394 = vrot.lane.b32.xlu0 %v1388_v1, %s2740_s0 }
 0xb60   :  { %v1395_v59 = vpop.permute.xlu0 %1394 }
 0xb61   :  { %v1397_v17 = vsel %vm329_vm0, %v1391_v12, %v1395_v59 }
 0xb62   :  { %v1398_v18 = vpack.c.bf16 %v1397_v17, %v1397_v17 }
 0xb64   :  { %2357 = vmatmul.msk.bf16.vlgmr.msrb.gmra.mxu0 %vm1247_vm13, %v1398_v18  ;;  %2358 = vmatmul.msk.bf16.vlgmr.msrb.gmra.mxu1 %vm1247_vm13, %v1398_v18 }
 0xb65   :  { %1749 = vmatpush.bf16.msrb.mxu0 %v3018_v20 }
 0xb69   :  { %1750 = vmatpush.bf16.msrb.mxu0 %v3021_v57 }
 0xbe1   :  { %v1411_v7 = vpop.f32.mrf.mxu0  ;;  %v1424_v15 = vpop.f32.mrf.mxu1 }
 0xbe2   :  { %v1428_v23 = vadd.f32 %v1411_v7, %v1190_v21 }
 0xbe4   :  { %2628 = vtanh.f32 %v1428_v23  ;;  %v2359_v27 = vmul.f32 -1.442695, %v1428_v23 }
 0xbe6   :  { %2630 = vpow2.f32 %v2359_v27 }
 0xbe9   :  { %v1413_v24 = vpop.f32.mrf.mxu0  ;;  %v1426_v25 = vpop.f32.mrf.mxu1 }
 0xbea   :  { %v2629_v29 = vpop.eup %2628 }
 0xbeb   :  { %1451 = vrot.lane.b32.xlu2 %v2629_v29, %s2740_s0 }
 0xbec   :  { %v2631_v63 = vpop.eup %2630 }
 0xbed   :  { %v1432_v53 = vadd.f32 1.0, %v2631_v63 }
 0xbef   :  { %2632 = vrcp.f32 %v1432_v53  ;;  %v1444_v35 = vand.u32 2147483648, %v1432_v53  ;;  %vm1438_vm15 = vweird.f32 %v1432_v53  ;;  %v1442_v36 = vand.u32 2147483647, %v1432_v53 }
 0xbf1   :  { %v1445_v39 = vor.u32 1.1754944e-38, %v1444_v35  ;;  %vm1443_vm2 = vcmp.eq.f32.partialorder %v1442_v36, 8.507059e+37 }
 0xbf5   :  { %v2633_v20 = vpop.eup %2632 }
 0xbf6   :  { %v1434_v26 = vmul.f32 %v2633_v20, %v1432_v53  ;;  %vm1439_vm14 = vweird.f32 %v2633_v20 }
 0xbf7   :  { %vm1440_vm1 = vmor %vm1438_vm15, %vm1439_vm14 }
 0xbf8   :  { %v1435_v57 = vsub.f32 1.0, %v1434_v26 }
 0xbfa   :  { %v1436_v32 = vmul.f32 %v2633_v20, %v1435_v57 }
 0xbfc   :  { %v1437_v33 = vadd.f32 %v2633_v20, %v1436_v32 }
 0xbfe   :  { %v1441_v37 = vsel %vm1440_vm1, %v2633_v20, %v1437_v33 }
 0xbff   :  { %v1446_v40 = vsel %vm1443_vm2, %v1445_v39, %v1441_v37 }
 0xc00   :  { %v1449_v44 = vmul.f32 %v1446_v40, %v3014_v14  ;;  %v1010_v14 = vadd.f32 %v3035_v41, %v3007_v31 }
 0xc02   :  { %v1015_v49 = vadd.f32 %v1010_v14, %v2952_v10 }
 0xc04   :  { %v1020_v4 = vadd.f32 %v2956_v13, %v1015_v49 }
 0xc45   :  { %v1452_v60 = vpop.permute.xlu2 %1451 }
 0xc46   :  { %v1454_v42 = vmul.f32 %v1452_v60, %v1446_v40 }
 0xc48   :  { %1456 = vrot.lane.b32.xlu1 %v1454_v42, %s2741_s5 }
 0xcba   :  { %v1457_v50 = vpop.permute.xlu1 %1456 }
 0xcbb   :  { %v3057_v61 = vadd.f32 %v1457_v50, %v1449_v44 }
 0xcbd   :  { %2634 = vtanh.f32 %v3057_v61 }
 0xcc3   :  { %v2635_v51 = vpop.eup %2634 }
 0xcc4   :  { %1462 = vrot.lane.b32.xlu0 %v2635_v51, %s2740_s0 }
 0xcee   :  { %1027 = vadd.xlane.f32.xlu0 %v1019_v47 }
 0xd36   :  { %v1463_v11 = vpop.permute.xlu0 %1462 }
 0xd37   :  { %v1465_v16 = vmul.f32 %v1463_v11, %v1446_v40 }
 0xd39   :  { %v1466_v43 = vpack.c.bf16 %v1465_v16, %v1465_v16 }
 0xd3b   :  { %1468 = vrot.lane.b32.xlu2 %v1466_v43, %s2741_s5 }
 0xd61   :  { %v1028_v7 = vpop.xlane.xlu0 %1027 }
 0xd64   :  { %1029 = vadd.xlane.f32.xlu2 %v1020_v4 }
 0xd95   :  { %v1469_v55 = vpop.permute.xlu2 %1468 }
 0xd96   :  { %2360 = vmatmul.msk.bf16.vlgmr.msra.gmra.mxu2 %vm329_vm0, %v1469_v55 }
 0xdd7   :  { %v1030_v46 = vpop.xlane.xlu2 %1029 }
 0xdd8   :  { %v1034_v28 = vmul.f32 %v1030_v46, %v2892_v52 }
 0xdda   :  { %v3071_v22 = vsub.f32 %v1020_v4, %v1034_v28 }
 0xddc   :  { %v1042_v56 = vmul.f32 %v3071_v22, %v3071_v22 }
 0xdde   :  { %1049 = vadd.xlane.f32.xlu0 %v1042_v56 }
 0xdf2   :  { %1525 = vrot.lane.b32.xlu0 %v1465_v16, %s2741_s5 }
 0xe19   :  { %v1482_v31 = vpop.f32.mrf.mxu2 }
 0xe1a   :  { %v1483_v10 = vadd.f32 %v1482_v31, %v3037_v30 }
 0xe1c   :  { %v1486_v41 = vadd.f32 %v1483_v10, %v1424_v15  ;;  %v1033_v15 = vmul.f32 %v1028_v7, %v2892_v52 }
 0xe1e   :  { %2636 = vtanh.f32 %v1486_v41  ;;  %v2361_v48 = vmul.f32 -1.442695, %v1486_v41  ;;  %v1037_v23 = vsub.f32 %v1019_v47, %v1033_v15 }
 0xe20   :  { %2638 = vpow2.f32 %v2361_v48  ;;  %v1041_v24 = vmul.f32 %v1037_v23, %v1037_v23 }
 0xe21   :  { %v1484_v13 = vpop.f32.mrf.mxu2 }
 0xe24   :  { %v2637_v58 = vpop.eup %2636 }
 0xe25   :  { %1509 = vrot.lane.b32.xlu1 %v2637_v58, %s2740_s0 }
 0xe26   :  { %v2639_v62 = vpop.eup %2638 }
 0xe27   :  { %v1490_v8 = vadd.f32 1.0, %v2639_v62 }
 0xe29   :  { %2640 = vrcp.f32 %v1490_v8  ;;  %v1502_v1 = vand.u32 2147483648, %v1490_v8  ;;  %vm1496_vm4 = vweird.f32 %v1490_v8  ;;  %v1500_v12 = vand.u32 2147483647, %v1490_v8 }
 0xe2b   :  { %v1503_v17 = vor.u32 1.1754944e-38, %v1502_v1  ;;  %vm1501_vm6 = vcmp.eq.f32.partialorder %v1500_v12, 8.507059e+37 }
 0xe2f   :  { %v2641_v0 = vpop.eup %2640 }
 0xe30   :  { %v1492_v2 = vmul.f32 %v2641_v0, %v1490_v8  ;;  %vm1497_vm3 = vweird.f32 %v2641_v0 }
 0xe31   :  { %vm1498_vm5 = vmor %vm1496_vm4, %vm1497_vm3 }
 0xe32   :  { %v1493_v3 = vsub.f32 1.0, %v1492_v2 }
 0xe34   :  { %v1494_v6 = vmul.f32 %v2641_v0, %v1493_v3 }
 0xe36   :  { %v1495_v9 = vadd.f32 %v2641_v0, %v1494_v6 }
 0xe38   :  { %v1499_v59 = vsel %vm1498_vm5, %v2641_v0, %v1495_v9 }
 0xe39   :  { %v1504_v19 = vsel %vm1501_vm6, %v1503_v17, %v1499_v59 }
 0xe3a   :  { %v1507_v25 = vmul.f32 %v1504_v19, %v3043_v5 }
 0xe51   :  { %v1050_v53 = vpop.xlane.xlu0 %1049 }
 0xe52   :  { %v1054_v20 = vmul.f32 %v1050_v53, %v2892_v52 }
 0xe54   :  { %v1058_v26 = vadd.f32 1e-05, %v1054_v20 }
 0xe56   :  { %vm1095_vm8 = vweird.f32 %v1058_v26 }
 0xe97   :  { %v1510_v18 = vpop.permute.xlu1 %1509 }
 0xe98   :  { %v1512_v21 = vmul.f32 %v1510_v18, %v1504_v19 }
 0xe9a   :  { %1514 = vrot.lane.b32.xlu1 %v1512_v21, %s2741_s5 }
 0xec4   :  { %1047 = vadd.xlane.f32.xlu1 %v1041_v24 }
 0xf0c   :  { %v1515_v29 = vpop.permute.xlu1 %1514 }
 0xf0d   :  { %v3081_v27 = vadd.f32 %v1515_v29, %v1507_v25 }
 0xf0f   :  { %2642 = vtanh.f32 %v3081_v27 }
 0xf10   :  { %2644 = vrsqrt.f32 %v1058_v26 }
 0xf15   :  { %v2643_v63 = vpop.eup %2642 }
 0xf16   :  { %1520 = vrot.lane.b32.xlu2 %v2643_v63, %s2740_s0  ;;  %v2645_v57 = vpop.eup %2644 }
 0xf17   :  { %v1090_v32 = vmul.f32 %v2645_v57, %v1058_v26  ;;  %vm1096_vm7 = vweird.f32 %v2645_v57 }
 0xf18   :  { %vm1097_vm9 = vmor %vm1095_vm8, %vm1096_vm7 }
 0xf19   :  { %v1091_v33 = vmul.f32 %v2645_v57, %v1090_v32 }
 0xf1b   :  { %v1092_v37 = vmul.f32 0.5, %v1091_v33 }
 0xf1d   :  { %v1093_v39 = vsub.f32 1.5, %v1092_v37 }
 0xf1f   :  { %v1094_v40 = vmul.f32 %v2645_v57, %v1093_v39 }
 0xf21   :  { %v1098_v51 = vsel %vm1097_vm9, %v2645_v57, %v1094_v40 }
 0xf22   :  { %v1102_v47 = vmul.f32 %v1098_v51, %v3071_v22  ;;  %v1526_v22 = vpop.permute.xlu0 %1525 }
 0xf24   :  { %v1106_v43 = vmul.f32 %v1102_v47, %v2998_v34 }
 0xf26   :  { %v1110_v4 = vadd.f32 %v1106_v43, %v3002_v38 }
 0xf37   :  { %v1048_v35 = vpop.xlane.xlu1 %1047 }
 0xf38   :  { %v1053_v36 = vmul.f32 %v1048_v35, %v2892_v52 }
 0xf3a   :  { %v1057_v5 = vadd.f32 1e-05, %v1053_v36 }
 0xf3c   :  { %2646 = vrsqrt.f32 %v1057_v5  ;;  %vm1085_vm11 = vweird.f32 %v1057_v5 }
 0xf42   :  { %v2647_v60 = vpop.eup %2646 }
 0xf43   :  { %v1080_v42 = vmul.f32 %v2647_v60, %v1057_v5  ;;  %vm1086_vm10 = vweird.f32 %v2647_v60 }
 0xf44   :  { %vm1087_vm12 = vmor %vm1085_vm11, %vm1086_vm10 }
 0xf45   :  { %v1081_v44 = vmul.f32 %v2647_v60, %v1080_v42 }
 0xf47   :  { %v1082_v50 = vmul.f32 0.5, %v1081_v44 }
 0xf49   :  { %v1083_v54 = vsub.f32 1.5, %v1082_v50 }
 0xf4b   :  { %v1084_v11 = vmul.f32 %v2647_v60, %v1083_v54 }
 0xf4d   :  { %v1088_v52 = vsel %vm1087_vm12, %v2647_v60, %v1084_v11 }
 0xf4e   :  { %v1101_v16 = vmul.f32 %v1088_v52, %v1037_v23 }
 0xf50   :  { %v1105_v14 = vmul.f32 %v1101_v16, %v2998_v34 }
 0xf52   :  { %v1109_v49 = vadd.f32 %v1105_v14, %v3002_v38 }
 0xf54   :  { %v1112_v55 = vpack.c.bf16 %v1110_v4, %v1109_v49 }
 0xf56   :  { %1191 = vmatmul.bf16.gmra.mxu3 %v1112_v55 }
 0xf70   :  { %v1521_v46 = vpop.permute.xlu2 %1520 }
 0xf71   :  { %v1523_v28 = vmul.f32 %v1521_v46, %v1504_v19 }
 0xf73   :  { %1529 = vrot.lane.b32.xlu1 %v1523_v28, %s2740_s0 }
 0xfd9   :  { %v1192_v34 = vpop.f32.mrf.mxu3 }
 0xfda   :  { %v1193_v38 = vadd.f32 %v1192_v34, %v3009_v45 }
 0xfe1   :  { %v3096_v41 = vpop.f32.mrf.mxu3 }
 0xfe5   :  { %v1530_v56 = vpop.permute.xlu1 %1529 }
 0xfe6   :  { %v1532_v31 = vsel %vm329_vm0, %v1526_v22, %v1530_v56 }
 0xfe7   :  { %v1533_v10 = vpack.c.bf16 %v1532_v31, %v1532_v31 }
 0xfe9   :  { %2362 = vmatmul.msk.bf16.vlgmr.msra.gmra.mxu3 %vm1247_vm13, %v1533_v10  ;;  %2363 = vmatmul.msk.bf16.vlgmr.msra.gmra.mxu0 %vm1247_vm13, %v1533_v10 }
0x1066   :  { %v1559_v13 = vpop.f32.mrf.mxu0 }
0x106c   :  { %v1546_v58 = vpop.f32.mrf.mxu3 }
0x106d   :  { %v1563_v48 = vadd.f32 %v1546_v58, %v1193_v38 }
0x106e   :  { %v1561_v62 = vpop.f32.mrf.mxu0 }
0x106f   :  { %2648 = vtanh.f32 %v1563_v48  ;;  %v2364_v2 = vmul.f32 -1.442695, %v1563_v48 }
0x1071   :  { %2650 = vpow2.f32 %v2364_v2 }
0x1074   :  { %v1548_v8 = vpop.f32.mrf.mxu3 }
0x1075   :  { %v2649_v0 = vpop.eup %2648 }
0x1076   :  { %1586 = vrot.lane.b32.xlu2 %v2649_v0, %s2740_s0 }
0x1077   :  { %v2651_v3 = vpop.eup %2650 }
0x1078   :  { %v1567_v6 = vadd.f32 1.0, %v2651_v3 }
0x107a   :  { %2652 = vrcp.f32 %v1567_v6  ;;  %v1579_v18 = vand.u32 2147483648, %v1567_v6  ;;  %vm1573_vm15 = vweird.f32 %v1567_v6  ;;  %v1577_v19 = vand.u32 2147483647, %v1567_v6 }
0x107c   :  { %v1580_v7 = vor.u32 1.1754944e-38, %v1579_v18  ;;  %vm1578_vm2 = vcmp.eq.f32.partialorder %v1577_v19, 8.507059e+37 }
0x1080   :  { %v2653_v9 = vpop.eup %2652 }
0x1081   :  { %v1569_v1 = vmul.f32 %v2653_v9, %v1567_v6  ;;  %vm1574_vm14 = vweird.f32 %v2653_v9 }
0x1082   :  { %vm1575_vm1 = vmor %vm1573_vm15, %vm1574_vm14 }
0x1083   :  { %v1570_v12 = vsub.f32 1.0, %v1569_v1 }
0x1085   :  { %v1571_v59 = vmul.f32 %v2653_v9, %v1570_v12 }
0x1087   :  { %v1572_v17 = vadd.f32 %v2653_v9, %v1571_v59 }
0x1089   :  { %v1576_v21 = vsel %vm1575_vm1, %v2653_v9, %v1572_v17 }
0x108a   :  { %v1581_v23 = vsel %vm1578_vm2, %v1580_v7, %v1576_v21 }
0x108b   :  { %v1584_v25 = vmul.f32 %v1581_v23, %v3057_v61 }
0x10d0   :  { %v1587_v15 = vpop.permute.xlu2 %1586 }
0x10d1   :  { %v1589_v24 = vmul.f32 %v1587_v15, %v1581_v23 }
0x10d3   :  { %1591 = vrot.lane.b32.xlu0 %v1589_v24, %s2741_s5 }
0x1145   :  { %v1592_v29 = vpop.permute.xlu0 %1591 }
0x1146   :  { %v3102_v63 = vadd.f32 %v1592_v29, %v1584_v25 }
0x1148   :  { %2654 = vtanh.f32 %v3102_v63 }
0x114e   :  { %v2655_v53 = vpop.eup %2654 }
0x114f   :  { %1597 = vrot.lane.b32.xlu2 %v2655_v53, %s2740_s0 }
0x11a9   :  { %v1598_v20 = vpop.permute.xlu2 %1597 }
0x11aa   :  { %v1600_v26 = vmul.f32 %v1598_v20, %v1581_v23 }
0x11ac   :  { %v1601_v57 = vpack.c.bf16 %v1600_v26, %v1600_v26 }
0x11ae   :  { %1603 = vrot.lane.b32.xlu0 %v1601_v57, %s2741_s5 }
0x1220   :  { %v1604_v32 = vpop.permute.xlu0 %1603 }
0x1221   :  { %2365 = vmatmul.msk.bf16.vlgmr.msra.gmra.mxu1 %vm329_vm0, %v1604_v32 }
0x129e   :  { %v1617_v33 = vpop.f32.mrf.mxu1 }
0x129f   :  { %v1618_v35 = vadd.f32 %v1617_v33, %v3037_v30 }
0x12a1   :  { %v1621_v61 = vadd.f32 %v1618_v35, %v1559_v13 }
0x12a3   :  { %2656 = vtanh.f32 %v1621_v61  ;;  %v2366_v37 = vmul.f32 -1.442695, %v1621_v61 }
0x12a5   :  { %2658 = vpow2.f32 %v2366_v37 }
0x12a6   :  { %v1619_v36 = vpop.f32.mrf.mxu1 }
0x12a9   :  { %v2657_v5 = vpop.eup %2656 }
0x12aa   :  { %1644 = vrot.lane.b32.xlu1 %v2657_v5, %s2740_s0 }
0x12ab   :  { %v2659_v39 = vpop.eup %2658 }
0x12ac   :  { %v1625_v60 = vadd.f32 1.0, %v2659_v39 }
0x12ae   :  { %2660 = vrcp.f32 %v1625_v60  ;;  %v1637_v54 = vand.u32 2147483648, %v1625_v60  ;;  %vm1631_vm4 = vweird.f32 %v1625_v60  ;;  %v1635_v47 = vand.u32 2147483647, %v1625_v60 }
0x12b0   :  { %v1638_v52 = vor.u32 1.1754944e-38, %v1637_v54  ;;  %vm1636_vm6 = vcmp.eq.f32.partialorder %v1635_v47, 8.507059e+37 }
0x12b2   :  { %1660 = vrot.lane.b32.xlu1 %v1600_v26, %s2741_s5 }
0x12b4   :  { %v2661_v40 = vpop.eup %2660 }
0x12b5   :  { %v1627_v42 = vmul.f32 %v2661_v40, %v1625_v60  ;;  %vm1632_vm3 = vweird.f32 %v2661_v40 }
0x12b6   :  { %vm1633_vm5 = vmor %vm1631_vm4, %vm1632_vm3 }
0x12b7   :  { %v1628_v44 = vsub.f32 1.0, %v1627_v42 }
0x12b9   :  { %v1629_v50 = vmul.f32 %v2661_v40, %v1628_v44 }
0x12bb   :  { %v1630_v51 = vadd.f32 %v2661_v40, %v1629_v50 }
0x12bd   :  { %v1634_v11 = vsel %vm1633_vm5, %v2661_v40, %v1630_v51 }
0x12be   :  { %v1639_v43 = vsel %vm1636_vm6, %v1638_v52, %v1634_v11 }
0x12bf   :  { %v1642_v49 = vmul.f32 %v1639_v43, %v3081_v27  ;;  %v1195_v27 = vadd.f32 %v3096_v41, %v3009_v45 }
0x131c   :  { %v1645_v16 = vpop.permute.xlu1 %1644 }
0x131d   :  { %v1647_v14 = vmul.f32 %v1645_v16, %v1639_v43 }
0x131f   :  { %1649 = vrot.lane.b32.xlu2 %v1647_v14, %s2741_s5 }
0x1324   :  { %v1661_v56 = vpop.permute.xlu1 %1660 }
0x1379   :  { %v1650_v4 = vpop.permute.xlu2 %1649 }
0x137a   :  { %v3113_v55 = vadd.f32 %v1650_v4, %v1642_v49  ;;  %v2382_v49 = vld [vmem:[#allocation2 + $0x528] sm:$0xf]  ;;  %v2539_v4 = vld [vmem:[#allocation2 + $0x530] sm:$0xf0] }
0x137c   :  { %2662 = vtanh.f32 %v3113_v55 }
0x1382   :  { %v2663_v46 = vpop.eup %2662 }
0x1383   :  { %1655 = vrot.lane.b32.xlu0 %v2663_v46, %s2740_s0  ;;  %v2538_v46 = vld [vmem:[#allocation2 + $0x52c] sm:$0xf] }
0x13f5   :  { %v1656_v28 = vpop.permute.xlu0 %1655 }
0x13f6   :  { %v1658_v22 = vmul.f32 %v1656_v28, %v1639_v43  ;;  %v2383_v28 = vor.u32 %v2539_v4, %v2382_v49  ;;  %v1800_v49 = vld [vmem:[#allocation4 + $0xdc] ss:$8 sm:$0x3] }
0x13f7   :  { %v1802_v4 = vperm.slane %v1800_v49, 0 }
0x13f8   :  { %1664 = vrot.lane.b32.xlu2 %v1658_v22, %s2740_s0  ;;  %v2384_v22 = vld [vmem:[#allocation2 + $0x534] sm:$0xf0]  ;;  %1838 = vmatpush.bf16.msrb.mxu1 %v2383_v28 }
0x1452   :  { %v1665_v31 = vpop.permute.xlu2 %1664 }
0x1453   :  { %v1667_v10 = vsel %vm329_vm0, %v1661_v56, %v1665_v31  ;;  %v2374_v56 = vld [vmem:[#allocation2 + $0x510] sm:$0xf]  ;;  %v2537_v31 = vld [vmem:[#allocation2 + $0x518] sm:$0xf0] }
0x1454   :  { %v1668_v34 = vpack.c.bf16 %v1667_v10, %v1667_v10  ;;  %v2387_v10 = vor.u32 %v2538_v46, %v2384_v22 }
0x1456   :  { %2367 = vmatmul.msk.bf16.vlgmr.msrb.gmra.mxu2 %vm1247_vm13, %v1668_v34  ;;  %2368 = vmatmul.msk.bf16.vlgmr.msrb.gmra.mxu3 %vm1247_vm13, %v1668_v34  ;;  %v2536_v34 = vld [vmem:[#allocation2 + $0x514] sm:$0xf] }
0x1457   :  { %1851 = vmatpush.bf16.msra.mxu2 %v2387_v10 }
0x14d9   :  { %v1681_v13 = vpop.f32.mrf.mxu2  ;;  %v1694_v38 = vpop.f32.mrf.mxu3 }
0x14da   :  { %v1698_v58 = vadd.f32 %v1681_v13, %v1195_v27  ;;  %v2376_v27 = vld [vmem:[#allocation2 + $0x51c] sm:$0xf0]  ;;  %v2375_v13 = vor.u32 %v2537_v31, %v2374_v56  ;;  %v1803_v56 = vperm.slane %v1800_v49, 1 }
0x14dc   :  { %2664 = vtanh.f32 %v1698_v58  ;;  %v2369_v0 = vmul.f32 -1.442695, %v1698_v58  ;;  %1839 = vmatpush.bf16.msrb.mxu1 %v2375_v13 }
0x14de   :  { %2666 = vpow2.f32 %v2369_v0  ;;  %v2416_v0 = vld [vmem:[#allocation2 + $0x5d0] sm:$0xf] }
0x14e1   :  { %v1683_v48 = vpop.f32.mrf.mxu2  ;;  %v1696_v62 = vpop.f32.mrf.mxu3 }
0x14e2   :  { %v2665_v8 = vpop.eup %2664  ;;  %v2420_v62 = vld [vmem:[#allocation2 + $0x5e8] sm:$0xf] }
0x14e3   :  { %1721 = vrot.lane.b32.xlu0 %v2665_v8, %s2740_s0  ;;  %v2547_v8 = vld [vmem:[#allocation2 + $0x5f0] sm:$0xf0] }
0x14e4   :  { %v2667_v2 = vpop.eup %2666 }
0x14e5   :  { %v1702_v3 = vadd.f32 1.0, %v2667_v2  ;;  %v2421_v2 = vor.u32 %v2547_v8, %v2420_v62 }
0x14e7   :  { %2668 = vrcp.f32 %v1702_v3  ;;  %v1714_v45 = vand.u32 2147483648, %v1702_v3  ;;  %vm1708_vm7 = vweird.f32 %v1702_v3  ;;  %v1712_v41 = vand.u32 2147483647, %v1702_v3  ;;  %1989 = vmatpush.bf16.msra.mxu3 %v2421_v2 }
0x14e9   :  { %v1715_v18 = vor.u32 1.1754944e-38, %v1714_v45  ;;  %vm1713_vm9 = vcmp.eq.f32.partialorder %v1712_v41, 8.507059e+37  ;;  %v2554_v45 = vld [vmem:[#allocation2 + $0x698] sm:$0xf0]  ;;  %v2412_v41 = vld [vmem:[#allocation2 + $0x5b8] sm:$0xf] }
0x14ed   :  { %v2669_v6 = vpop.eup %2668 }
0x14ee   :  { %v1704_v9 = vmul.f32 %v2669_v6, %v1702_v3  ;;  %vm1709_vm13 = vweird.f32 %v2669_v6  ;;  %v2546_v3 = vld [vmem:[#allocation2 + $0x5d8] sm:$0xf0] }
0x14ef   :  { %vm1710_vm8 = vmor %vm1708_vm7, %vm1709_vm13 }
0x14f0   :  { %v1705_v1 = vsub.f32 1.0, %v1704_v9  ;;  %v2555_v9 = vld [vmem:[#allocation2 + $0x6b0] sm:$0xf0] }
0x14f2   :  { %v1706_v12 = vmul.f32 %v2669_v6, %v1705_v1 }
0x14f4   :  { %v1707_v59 = vadd.f32 %v2669_v6, %v1706_v12  ;;  %v2448_v12 = vld [vmem:[#allocation2 + $0x690] sm:$0xf] }
0x14f6   :  { %v1711_v17 = vsel %vm1710_vm8, %v2669_v6, %v1707_v59  ;;  %v2452_v6 = vld [vmem:[#allocation2 + $0x6a8] sm:$0xf]  ;;  %v2417_v59 = vor.u32 %v2546_v3, %v2416_v0 }
0x14f7   :  { %v1716_v21 = vsel %vm1713_vm9, %v1715_v18, %v1711_v17  ;;  %v2453_v1 = vor.u32 %v2555_v9, %v2452_v6  ;;  %v2545_v17 = vld [vmem:[#allocation2 + $0x5c0] sm:$0xf0]  ;;  %v2449_v18 = vor.u32 %v2554_v45, %v2448_v12 }
0x14f8   :  { %v1719_v15 = vmul.f32 %v1716_v21, %v3102_v63  ;;  %1990 = vmatpush.bf16.msra.mxu3 %v2417_v59 }
0x14f9   :  { %2002 = vmatpush.bf16.msra.mxu0 %v2453_v1 }
0x14fd   :  { %2003 = vmatpush.bf16.msra.mxu0 %v2449_v18 }
0x1555   :  { %v1722_v19 = vpop.permute.xlu0 %1721 }
0x1556   :  { %v1724_v7 = vmul.f32 %v1722_v19, %v1716_v21  ;;  %v2444_v19 = vld [vmem:[#allocation2 + $0x678] sm:$0xf] }
0x1558   :  { %1726 = vrot.lane.b32.xlu1 %v1724_v7, %s2741_s5  ;;  %v2413_v7 = vor.u32 %v2545_v17, %v2412_v41 }
0x155a   :  { %1991 = vmatpush.bf16.msra.mxu3 %v2413_v7 }
0x15ca   :  { %v1727_v23 = vpop.permute.xlu1 %1726 }
0x15cb   :  { %v1729_v24 = vadd.f32 %v1727_v23, %v1719_v15  ;;  %v2408_v15 = vld [vmem:[#allocation2 + $0x5a0] sm:$0xf]  ;;  %v2544_v23 = vld [vmem:[#allocation2 + $0x5a8] sm:$0xf0] }
0x15cd   :  { %2670 = vtanh.f32 %v1729_v24 }
0x15d3   :  { %v2671_v25 = vpop.eup %2670 }
0x15d4   :  { %1732 = vrot.lane.b32.xlu2 %v2671_v25, %s2740_s0  ;;  %v2440_v25 = vld [vmem:[#allocation2 + $0x660] sm:$0xf] }
0x162e   :  { %v1733_v29 = vpop.permute.xlu2 %1732 }
0x162f   :  { %v1735_v53 = vmul.f32 %v1733_v29, %v1716_v21  ;;  %v2553_v21 = vld [vmem:[#allocation2 + $0x680] sm:$0xf0]  ;;  %v2552_v29 = vld [vmem:[#allocation2 + $0x668] sm:$0xf0] }
0x1630   :  { %v2445_v24 = vor.u32 %v2553_v21, %v2444_v19 }
0x1631   :  { %v1736_v20 = vpack.c.bf16 %v1735_v53, %v1735_v53  ;;  %v2409_v53 = vor.u32 %v2544_v23, %v2408_v15 }
0x1632   :  { %2004 = vmatpush.bf16.msra.mxu0 %v2445_v24 }
0x1633   :  { %1738 = vrot.lane.b32.xlu0 %v1736_v20, %s2741_s5  ;;  %v2404_v20 = vld [vmem:[#allocation2 + $0x588] sm:$0xf]  ;;  %1992 = vmatpush.bf16.msra.mxu3 %v2409_v53 }
0x16a5   :  { %v1739_v26 = vpop.permute.xlu0 %1738 }
0x16a6   :  { %2370 = vmatmul.msk.bf16.vlgmr.msrb.gmra.mxu0 %vm329_vm0, %v1739_v26  ;;  %v2543_v26 = vld [vmem:[#allocation2 + $0x590] sm:$0xf0] }
0x1723   :  { %v1752_v57 = vpop.f32.mrf.mxu0 }
0x1724   :  { %v1753_v32 = vadd.f32 %v1752_v57, %v3037_v30  ;;  %v2441_v57 = vor.u32 %v2552_v29, %v2440_v25 }
0x1726   :  { %v1756_v33 = vadd.f32 %v1753_v32, %v1694_v38  ;;  %v2436_v32 = vld [vmem:[#allocation2 + $0x648] sm:$0xf]  ;;  %2005 = vmatpush.bf16.msra.mxu0 %v2441_v57 }
0x1728   :  { %2672 = vtanh.f32 %v1756_v33  ;;  %v2371_v61 = vmul.f32 -1.442695, %v1756_v33  ;;  %v2551_v33 = vld [vmem:[#allocation2 + $0x650] sm:$0xf0] }
0x172a   :  { %2674 = vpow2.f32 %v2371_v61  ;;  %v2542_v61 = vld [vmem:[#allocation2 + $0x578] sm:$0xf0] }
0x172b   :  { %v1754_v63 = vpop.f32.mrf.mxu0 }
0x172c   :  { %v2405_v63 = vor.u32 %v2543_v26, %v2404_v20 }
0x172e   :  { %v2673_v35 = vpop.eup %2672  ;;  %1993 = vmatpush.bf16.msra.mxu3 %v2405_v63 }
0x172f   :  { %1779 = vrot.lane.b32.xlu1 %v2673_v35, %s2740_s0  ;;  %v2400_v35 = vld [vmem:[#allocation2 + $0x570] sm:$0xf] }
0x1730   :  { %v2675_v36 = vpop.eup %2674 }
0x1731   :  { %v1760_v5 = vadd.f32 1.0, %v2675_v36  ;;  %v2437_v36 = vor.u32 %v2551_v33, %v2436_v32 }
0x1733   :  { %2676 = vrcp.f32 %v1760_v5  ;;  %v1772_v44 = vand.u32 2147483648, %v1760_v5  ;;  %vm1766_vm11 = vweird.f32 %v1760_v5  ;;  %v1770_v30 = vand.u32 2147483647, %v1760_v5  ;;  %2006 = vmatpush.bf16.msra.mxu0 %v2437_v36 }
0x1735   :  { %v1773_v51 = vor.u32 1.1754944e-38, %v1772_v44  ;;  %vm1771_vm14 = vcmp.eq.f32.partialorder %v1770_v30, 8.507059e+37  ;;  %v2550_v44 = vld [vmem:[#allocation2 + $0x638] sm:$0xf0] }
0x1739   :  { %v2677_v37 = vpop.eup %2676 }
0x173a   :  { %v1762_v39 = vmul.f32 %v2677_v37, %v1760_v5  ;;  %vm1767_vm10 = vweird.f32 %v2677_v37  ;;  %v2401_v5 = vor.u32 %v2542_v61, %v2400_v35 }
0x173b   :  { %vm1768_vm12 = vmor %vm1766_vm11, %vm1767_vm10 }
0x173c   :  { %v1763_v60 = vsub.f32 1.0, %v1762_v39  ;;  %v2541_v39 = vld [vmem:[#allocation2 + $0x560] sm:$0xf0]  ;;  %1994 = vmatpush.bf16.msra.mxu3 %v2401_v5 }
0x173e   :  { %v1764_v40 = vmul.f32 %v2677_v37, %v1763_v60 }
0x1740   :  { %v1765_v42 = vadd.f32 %v2677_v37, %v1764_v40 }
0x1742   :  { %v1769_v50 = vsel %vm1768_vm12, %v2677_v37, %v1765_v42  ;;  %v2396_v37 = vld [vmem:[#allocation2 + $0x558] sm:$0xf]  ;;  %v2432_v42 = vld [vmem:[#allocation2 + $0x630] sm:$0xf] }
0x1743   :  { %v1774_v47 = vsel %vm1771_vm14, %v1773_v51, %v1769_v50  ;;  %v2397_v60 = vor.u32 %v2541_v39, %v2396_v37  ;;  %v2433_v30 = vor.u32 %v2550_v44, %v2432_v42  ;;  %v2392_v50 = vld [vmem:[#allocation2 + $0x540] sm:$0xf]  ;;  %v2540_v51 = vld [vmem:[#allocation2 + $0x548] sm:$0xf0] }
0x1744   :  { %v1777_v52 = vmul.f32 %v1774_v47, %v3113_v55  ;;  %v2379_v55 = vor.u32 %v2536_v34, %v2376_v27 }
0x1745   :  { %1995 = vmatpush.bf16.msra.mxu3 %v2397_v60  ;;  %2007 = vmatpush.bf16.msra.mxu0 %v2433_v30 }
0x1746   :  { %1852 = vmatpush.bf16.msra.mxu2 %v2379_v55  ;;  %v1892_v55 = vld [vmem:[#allocation4 + $0xdd] ss:$0 sm:$0xff] }
0x17a1   :  { %v1780_v54 = vpop.permute.xlu1 %1779 }
0x17a2   :  { %v1782_v11 = vmul.f32 %v1780_v54, %v1774_v47  ;;  %v2393_v54 = vor.u32 %v2540_v51, %v2392_v50 }
0x17a4   :  { %1784 = vrot.lane.b32.xlu2 %v1782_v11, %s2741_s5  ;;  %v2549_v11 = vld [vmem:[#allocation2 + $0x620] sm:$0xf0]  ;;  %1996 = vmatpush.bf16.msra.mxu3 %v2393_v54 }
0x17fe   :  { %v1785_v16 = vpop.permute.xlu2 %1784 }
0x17ff   :  { %v1787_v43 = vadd.f32 %v1785_v16, %v1777_v52  ;;  %v2424_v16 = vld [vmem:[#allocation2 + $0x600] sm:$0xf] }
0x1801   :  { %2678 = vtanh.f32 %v1787_v43  ;;  %v2548_v43 = vld [vmem:[#allocation2 + $0x608] sm:$0xf0] }
0x1807   :  { %v2679_v14 = vpop.eup %2678 }
0x1808   :  { %1790 = vrot.lane.b32.xlu0 %v2679_v14, %s2740_s0  ;;  %v2425_v14 = vor.u32 %v2548_v43, %v2424_v16 }
0x187a   :  { %v1791_v38 = vpop.permute.xlu0 %1790 }
0x187b   :  { %v1793_v58 = vmul.f32 %v1791_v38, %v1774_v47  ;;  %v2428_v47 = vld [vmem:[#allocation2 + $0x618] sm:$0xf] }
0x187c   :  { %v2429_v52 = vor.u32 %v2549_v11, %v2428_v47 }
0x187d   :  { %v1794_v48 = vpack.c.bf16 %v1793_v58, %v1793_v58 }
0x187e   :  { %2008 = vmatpush.bf16.msra.mxu0 %v2429_v52 }
0x187f   :  { %1807 = vrot.lane.b32.xlu1 %v1794_v48, %s2741_s5 }
0x1882   :  { %2009 = vmatpush.bf16.msra.mxu0 %v2425_v14 }
0x18f1   :  { %v1808_v40 = vpop.permute.xlu1 %1807 }
0x18f2   :  { %2388 = vmatmul.msk.bf16.vlgmr.msrb.gmra.mxu1 %vm329_vm0, %v1808_v40  ;;  %2389 = vmatmul.msk.bf16.vlgmr.msra.gmra.mxu2 %vm329_vm0, %v1808_v40 }
0x196f   :  { %v1841_v46 = vpop.f32.mrf.mxu1 }
0x1970   :  { %v1842_v28 = vadd.f32 %v1841_v46, %v1802_v4 }
0x1972   :  { %v1858_v22 = vpack.c.bf16 %v1842_v28, %v1842_v28 }
0x1974   :  { %1997 = vmatmul.bf16.vlgmr.msra.gmra.mxu3 %v1858_v22 }
0x1975   :  { %v1854_v31 = vpop.f32.mrf.mxu2 }
0x1976   :  { %v1855_v10 = vadd.f32 %v1854_v31, %v1803_v56 }
0x1977   :  { %v1843_v34 = vpop.f32.mrf.mxu1 }
0x1978   :  { %v1859_v27 = vpack.c.bf16 %v1855_v10, %v1855_v10 }
0x197a   :  { %2010 = vmatmul.bf16.vlgmr.msra.gmra.mxu0 %v1859_v27 }
0x197d   :  { %v1856_v13 = vpop.f32.mrf.mxu2 }
0x19f7   :  { %v1998_v38 = vpop.f32.mrf.mxu3  ;;  %v2011_v58 = vpop.f32.mrf.mxu0 }
0x19f8   :  { %v1999_v48 = vadd.f32 %v1998_v38, %v1892_v55 }
0x19fa   :  { %v2012_v62 = vadd.f32 %v2011_v58, %v1999_v48 }
0x19fc   :  { %2015 = vst [vmem:[%s3143_s3] sm:$0xff] %v2012_v62 }
0x19ff   :  { %v2000_v8 = vpop.f32.mrf.mxu3  ;;  %v2013_v0 = vpop.f32.mrf.mxu0 }
0x1a00   :  { %2020 = vsyncpa [#allocation3], 1 }
0x1a01   :  { %2021 = vsyncpa [#allocation5], 1 }

</bundles_post_ra>
